<compile_context>
chip_gen: v6e
topology: v6e:2x2x1
jax: 0.10.0
libtpu: 0.0.40
codegen_flags: <defaults>
</compile_context>

<pallas_src>
import jax
import jax.numpy as jnp
from jax.experimental import pallas as pl
from jax.experimental.pallas import tpu as pltpu

# ----- model hyper-parameters (small, consistent with a DPR/BERT encoder) -----
B = 2          # batch
S = 8          # sequence length (same for question and context)
H = 32         # hidden size
NHEADS = 2     # attention heads
HD = H // NHEADS
FFN = 4 * H    # intermediate size
NLAYERS = 2    # transformer layers per encoder
VOCAB = 128
MAX_POS = 64
LN_EPS = 1e-12

ENC_KEYS = ['emb_g', 'emb_b']
LAYER_KEYS = ['wqkv', 'bqkv', 'wo', 'bo', 'g1', 'be1',
              'w1', 'b1', 'w2', 'b2', 'g2', 'be2']
WEIGHT_KEYS = ENC_KEYS + LAYER_KEYS


# ---------------------------------------------------------------------------
# Kernel
# ---------------------------------------------------------------------------
def _layer_norm(x, g, b):
    # One-pass LayerNorm: the two XLU reductions (E[x], E[x^2]) issue independently.
    mu = jnp.mean(x, axis=-1, keepdims=True)
    ms = jnp.mean(x * x, axis=-1, keepdims=True)
    var = jnp.maximum(ms - mu * mu, 0.0)
    return (x - mu) * jax.lax.rsqrt(var + LN_EPS) * g + b


def fused_encoder_kernel(x_ref, mask_ref, emb_g_ref, emb_b_ref,
                         wqkv_ref, bqkv_ref, wo_ref, bo_ref, g1_ref, be1_ref,
                         w1_ref, b1_ref, w2_ref, b2_ref, g2_ref, be2_ref,
                         o_ref, h_scr):
    """grid = (encoder, layer). One grid step = one transformer layer of one encoder.

    The (B*S, H) hidden state is carried across the layer axis in VMEM scratch; the
    per-layer weight blocks are streamed/prefetched by the BlockSpec pipeline.
    """
    l = pl.program_id(1)

    @pl.when(l == 0)
    def _():
        # Embedding LayerNorm seeds the carried hidden state.
        h_scr[...] = _layer_norm(x_ref[...].astype(jnp.float32),
                                 emb_g_ref[...], emb_b_ref[...])

    x = h_scr[...]                                        # (B*S, H) f32
    add_mask = mask_ref[...][:, None, :]                  # (B, 1, S) additive, f32

    # ---- self-attention ---------------------------------------------------
    # Fused QKV projection (scale folded into Wq at init).  Cast x once, reuse.
    xb = x.astype(jnp.bfloat16)
    qkv = jnp.dot(xb, wqkv_ref[...],
                  preferred_element_type=jnp.float32) + bqkv_ref[...]       # (B*S, 3H)
    qkv_b = qkv.astype(jnp.bfloat16)                      # single cast for all heads

    # Accumulate the output projection inside the head loop: no per-head scatter into
    # a VMEM scratch and no ctx reload before W_O (per-head (B*S,HD)x(HD,H) matmuls
    # are free filler on the otherwise idle MXU).
    attn = bo_ref[...]                                    # (1, H); broadcasts on 1st add
    for h in range(NHEADS):                               # static, NHEADS = 2
        qh = qkv_b[:, h * HD:(h + 1) * HD].reshape(B, S, HD)
        kh = qkv_b[:, H + h * HD:H + (h + 1) * HD].reshape(B, S, HD)
        vh = qkv_b[:, 2 * H + h * HD:2 * H + (h + 1) * HD].reshape(B, S, HD)

        scores = jnp.einsum('bqd,bkd->bqk', qh, kh,
                            preferred_element_type=jnp.float32) + add_mask  # (B,S,S) f32
        m = jnp.max(scores, axis=-1, keepdims=True)
        p = jnp.exp(scores - m)
        inv = pl.reciprocal(jnp.sum(p, axis=-1, keepdims=True), approx=True)  # EUP
        ctxh = jnp.einsum('bqk,bkd->bqd', (p * inv).astype(jnp.bfloat16), vh,
                          preferred_element_type=jnp.float32)               # (B,S,HD)
        attn = attn + jnp.dot(ctxh.reshape(B * S, HD).astype(jnp.bfloat16),
                              wo_ref[h * HD:(h + 1) * HD, :],
                              preferred_element_type=jnp.float32)
    # TODO(synk): folding heads into the einsum batch would drop the sub-tile lane
    #             slices but needs 4-D (0,2,1,3) relayouts whose Mosaic lowering is
    #             less robust at these tiny sizes; per-head loop kept, scatter removed.

    y = _layer_norm(x + attn, g1_ref[...], be1_ref[...])

    # ---- feed-forward -------------------------------------------------------
    # TODO(synk): HF DPR/BERT uses exact erf GELU; tanh approximation kept here for
    #             robust Mosaic lowering (small numeric difference).
    hh = jax.nn.gelu(
        jnp.dot(y.astype(jnp.bfloat16), w1_ref[...],
                preferred_element_type=jnp.float32) + b1_ref[...],
        approximate=True)
    z = jnp.dot(hh.astype(jnp.bfloat16), w2_ref[...],
                preferred_element_type=jnp.float32) + b2_ref[...]
    x_new = _layer_norm(y + z, g2_ref[...], be2_ref[...])
    h_scr[...] = x_new                                    # carry to next layer

    @pl.when(l == NLAYERS - 1)
    def _():
        # Emit only the [CLS] rows (DPR pooler_output with projection_dim=0).
        cls_rows = jnp.concatenate([x_new[b * S:b * S + 1, :] for b in range(B)],
                                   axis=0)                # (B, H)
        o_ref[...] = cls_rows.astype(o_ref.dtype)


# ---------------------------------------------------------------------------
# Pallas wrapper: one call for both encoders, layers streamed on a grid axis
# ---------------------------------------------------------------------------
def _enc_spec(arr):
    """Per-encoder block: select encoder e, full remaining array."""
    rest = arr.shape[1:]
    zeros = (0,) * len(rest)
    return pl.BlockSpec((None,) + rest, lambda e, l, _z=zeros: (e,) + _z)


def _layer_spec(arr):
    """Per-(encoder, layer) weight block: squeeze both leading axes."""
    rest = arr.shape[2:]
    zeros = (0,) * len(rest)
    return pl.BlockSpec((None, None) + rest, lambda e, l, _z=zeros: (e, l) + _z)


def _cost_estimate(in_arrays, out_bytes):
    flops_layer = (2 * B * S * H * 3 * H                 # fused QKV projection
                   + 2 * 2 * B * NHEADS * S * S * HD     # scores + context
                   + 2 * B * S * H * H                   # output projection
                   + 2 * 2 * B * S * H * FFN)            # FFN in + out
    flops = 2 * NLAYERS * flops_layer                    # 2 encoders
    transcendentals = 2 * NLAYERS * (B * NHEADS * S * S + B * S * FFN + 4 * B * S)
    bytes_accessed = int(sum(int(a.size) * a.dtype.itemsize for a in in_arrays))
    bytes_accessed += int(out_bytes)
    return pl.CostEstimate(flops=int(flops), transcendentals=int(transcendentals),
                           bytes_accessed=bytes_accessed)


def fused_dual_encoder(x, add_mask, w):
    # x: (2, B*S, H) f32 embedded inputs;  add_mask: (2, B, S) f32 additive mask.
    enc_arrays = [x, add_mask, w['emb_g'], w['emb_b']]
    layer_arrays = [w[k] for k in LAYER_KEYS]
    in_arrays = enc_arrays + layer_arrays
    in_specs = ([_enc_spec(a) for a in enc_arrays]
                + [_layer_spec(a) for a in layer_arrays])
    return pl.pallas_call(
        fused_encoder_kernel,
        out_shape=jax.ShapeDtypeStruct((2, B, H), jnp.float32),   # [CLS] rows only
        grid_spec=pltpu.PrefetchScalarGridSpec(
            num_scalar_prefetch=0,
            grid=(2, NLAYERS),                     # (encoder, layer)
            in_specs=in_specs,
            out_specs=pl.BlockSpec((None, B, H), lambda e, l: (e, 0, 0)),
            scratch_shapes=[pltpu.VMEM((B * S, H), jnp.float32)]),  # hidden-state carry
        compiler_params=pltpu.CompilerParams(
            dimension_semantics=("parallel", "arbitrary"),  # v7x: 1 encoder / TC
            vmem_limit_bytes=32 * 1024 * 1024),
        cost_estimate=_cost_estimate(in_arrays, 2 * B * H * 4),
    )(*in_arrays)


# ---------------------------------------------------------------------------
# Parameter init (deterministic, synthetic)
# ---------------------------------------------------------------------------
def init_encoder(key):
    def nrm(k, shape):
        return 0.02 * jax.random.normal(k, shape, jnp.float32)

    keys = jax.random.split(key, 3 + NLAYERS)
    params = {
        'word_emb': nrm(keys[0], (VOCAB, H)),
        'pos_emb':  nrm(keys[1], (MAX_POS, H)),
        'type_emb': nrm(keys[2], (2, H)),
        'emb_g': jnp.ones((1, H), jnp.float32),
        'emb_b': jnp.zeros((1, H), jnp.float32),
    }
    scale = 1.0 / (float(HD) ** 0.5)
    acc = {k: [] for k in LAYER_KEYS}
    for l in range(NLAYERS):
        lk = jax.random.split(keys[3 + l], 6)
        wq = nrm(lk[0], (H, H)) * scale          # fold attention scale into Wq
        wk = nrm(lk[1], (H, H))
        wv = nrm(lk[2], (H, H))
        acc['wqkv'].append(jnp.concatenate([wq, wk, wv], axis=1).astype(jnp.bfloat16))
        acc['bqkv'].append(jnp.zeros((1, 3 * H), jnp.float32))
        acc['wo'].append(nrm(lk[3], (H, H)).astype(jnp.bfloat16))
        acc['bo'].append(jnp.zeros((1, H), jnp.float32))
        acc['g1'].append(jnp.ones((1, H), jnp.float32))
        acc['be1'].append(jnp.zeros((1, H), jnp.float32))
        acc['w1'].append(nrm(lk[4], (H, FFN)).astype(jnp.bfloat16))
        acc['b1'].append(jnp.zeros((1, FFN), jnp.float32))
        acc['w2'].append(nrm(lk[5], (FFN, H)).astype(jnp.bfloat16))
        acc['b2'].append(jnp.zeros((1, H), jnp.float32))
        acc['g2'].append(jnp.ones((1, H), jnp.float32))
        acc['be2'].append(jnp.zeros((1, H), jnp.float32))
    for k, v in acc.items():
        params[k] = jnp.stack(v, axis=0)          # leading NLAYERS axis
    return params


# ---------------------------------------------------------------------------
# Combined-model forward (embedding gather in XLA, everything else in Pallas)
# ---------------------------------------------------------------------------
def _embed(params, input_ids):
    word = jnp.take(params['word_emb'], input_ids, axis=0)          # (B, S, H)
    pos = params['pos_emb'][:S][None, :, :]
    typ = params['type_emb'][0][None, None, :]                      # token_type_id = 0
    return word + pos + typ


def dpr_combined_forward(q_params, c_params,
                         question_input_ids, question_attention_mask,
                         context_input_ids, context_attention_mask):
    q_emb = _embed(q_params, question_input_ids).reshape(B * S, H)
    c_emb = _embed(c_params, context_input_ids).reshape(B * S, H)
    x = jnp.stack([q_emb, c_emb], axis=0)                            # (2, B*S, H)
    add_mask = jnp.stack(
        [(1.0 - question_attention_mask.astype(jnp.float32)) * -1e9,
         (1.0 - context_attention_mask.astype(jnp.float32)) * -1e9], axis=0)  # (2, B, S)
    stacked = {k: jnp.stack([q_params[k], c_params[k]], axis=0) for k in WEIGHT_KEYS}

    pooled = fused_dual_encoder(x, add_mask, stacked)                # (2, B, H)
    # DPR pooler_output with projection_dim=0: the [CLS] hidden state.
    question_outputs = pooled[0]
    context_outputs = pooled[1]
    return question_outputs, context_outputs


# ---------------------------------------------------------------------------
if __name__ == "__main__":
    root = jax.random.PRNGKey(0)
    k_qenc, k_cenc, k_qids, k_cids = jax.random.split(root, 4)

    q_params = init_encoder(k_qenc)
    c_params = init_encoder(k_cenc)

    question_input_ids = jax.random.randint(k_qids, (B, S), 0, VOCAB, dtype=jnp.int32)
    context_input_ids = jax.random.randint(k_cids, (B, S), 0, VOCAB, dtype=jnp.int32)
    question_attention_mask = jnp.array(
        [[1, 1, 1, 1, 1, 1, 1, 1],
         [1, 1, 1, 1, 1, 0, 0, 0]], dtype=jnp.int32)
    context_attention_mask = jnp.array(
        [[1, 1, 1, 1, 1, 1, 0, 0],
         [1, 1, 1, 1, 1, 1, 1, 1]], dtype=jnp.int32)

    fwd = jax.jit(dpr_combined_forward)
    q_out, c_out = fwd(q_params, c_params,
                       question_input_ids, question_attention_mask,
                       context_input_ids, context_attention_mask)

    jax.block_until_ready((q_out, c_out))
    assert q_out.shape == (B, H) and c_out.shape == (B, H)
    assert bool(jnp.all(jnp.isfinite(q_out))) and bool(jnp.all(jnp.isfinite(c_out)))
    print("KERNEL_OK")
</pallas_src>

<mosaic_0001>
module attributes {stable_mosaic.version = 11 : i64} {
  func.func @fused_encoder_kernel(%arg0: i32, %arg1: i32, %arg2: memref<1x16x32xf32, #tpu.memory_space<vmem>>, %arg3: memref<1x2x8xf32, #tpu.memory_space<vmem>>, %arg4: memref<1x1x32xf32, #tpu.memory_space<vmem>>, %arg5: memref<1x1x32xf32, #tpu.memory_space<vmem>>, %arg6: memref<1x1x32x96xbf16, #tpu.memory_space<vmem>>, %arg7: memref<1x1x1x96xf32, #tpu.memory_space<vmem>>, %arg8: memref<1x1x32x32xbf16, #tpu.memory_space<vmem>>, %arg9: memref<1x1x1x32xf32, #tpu.memory_space<vmem>>, %arg10: memref<1x1x1x32xf32, #tpu.memory_space<vmem>>, %arg11: memref<1x1x1x32xf32, #tpu.memory_space<vmem>>, %arg12: memref<1x1x32x128xbf16, #tpu.memory_space<vmem>>, %arg13: memref<1x1x1x128xf32, #tpu.memory_space<vmem>>, %arg14: memref<1x1x128x32xbf16, #tpu.memory_space<vmem>>, %arg15: memref<1x1x1x32xf32, #tpu.memory_space<vmem>>, %arg16: memref<1x1x1x32xf32, #tpu.memory_space<vmem>>, %arg17: memref<1x1x1x32xf32, #tpu.memory_space<vmem>>, %arg18: memref<1x2x32xf32, #tpu.memory_space<vmem>>, %arg19: memref<16x32xf32, #tpu.memory_space<vmem>>) attributes {dimension_semantics = [#tpu.dimension_semantics<parallel>, #tpu.dimension_semantics<arbitrary>], iteration_bounds = array<i64: 2, 2>, scalar_prefetch = 0 : i64, scratch_operands = 1 : i64, tpu.core_type = #tpu.core_type<tc>, window_params = [{transform_indices = @transform_0, window_bounds = array<i64: 1, 16, 32>}, {transform_indices = @transform_1, window_bounds = array<i64: 1, 2, 8>}, {transform_indices = @transform_2, window_bounds = array<i64: 1, 1, 32>}, {transform_indices = @transform_3, window_bounds = array<i64: 1, 1, 32>}, {transform_indices = @transform_4, window_bounds = array<i64: 1, 1, 32, 96>}, {transform_indices = @transform_5, window_bounds = array<i64: 1, 1, 1, 96>}, {transform_indices = @transform_6, window_bounds = array<i64: 1, 1, 32, 32>}, {transform_indices = @transform_7, window_bounds = array<i64: 1, 1, 1, 32>}, {transform_indices = @transform_8, window_bounds = array<i64: 1, 1, 1, 32>}, {transform_indices = @transform_9, window_bounds = array<i64: 1, 1, 1, 32>}, {transform_indices = @transform_10, window_bounds = array<i64: 1, 1, 32, 128>}, {transform_indices = @transform_11, window_bounds = array<i64: 1, 1, 1, 128>}, {transform_indices = @transform_12, window_bounds = array<i64: 1, 1, 128, 32>}, {transform_indices = @transform_13, window_bounds = array<i64: 1, 1, 1, 32>}, {transform_indices = @transform_14, window_bounds = array<i64: 1, 1, 1, 32>}, {transform_indices = @transform_15, window_bounds = array<i64: 1, 1, 1, 32>}, {transform_indices = @transform_16, window_bounds = array<i64: 1, 2, 32>}]} {
    %c0_i32 = arith.constant 0 : i32
    %0 = arith.cmpi eq, %arg1, %c0_i32 : i32
    %1 = arith.extui %0 : i1 to i32
    %c0_i32_0 = arith.constant 0 : i32
    %2 = arith.cmpi ne, %1, %c0_i32_0 : i32
    scf.if %2 {
      %c0_87 = arith.constant 0 : index
      %c0_88 = arith.constant 0 : index
      %c0_89 = arith.constant 0 : index
      %164 = vector.load %arg2[%c0_87, %c0_88, %c0_89] : memref<1x16x32xf32, #tpu.memory_space<vmem>>, vector<1x16x32xf32>
      %165 = vector.shape_cast %164 : vector<1x16x32xf32> to vector<16x32xf32>
      %c0_90 = arith.constant 0 : index
      %c0_91 = arith.constant 0 : index
      %c0_92 = arith.constant 0 : index
      %166 = vector.load %arg4[%c0_90, %c0_91, %c0_92] : memref<1x1x32xf32, #tpu.memory_space<vmem>>, vector<1x1x32xf32>
      %167 = vector.shape_cast %166 : vector<1x1x32xf32> to vector<1x32xf32>
      %c0_93 = arith.constant 0 : index
      %c0_94 = arith.constant 0 : index
      %c0_95 = arith.constant 0 : index
      %168 = vector.load %arg5[%c0_93, %c0_94, %c0_95] : memref<1x1x32xf32, #tpu.memory_space<vmem>>, vector<1x1x32xf32>
      %169 = vector.shape_cast %168 : vector<1x1x32xf32> to vector<1x32xf32>
      %cst_96 = arith.constant dense<0.000000e+00> : vector<16xf32>
      %170 = vector.multi_reduction <add>, %165, %cst_96 [1] : vector<16x32xf32> to vector<16xf32>
      %171 = vector.shape_cast %170 : vector<16xf32> to vector<16x1xf32>
      %cst_97 = arith.constant 3.200000e+01 : f32
      %172 = vector.broadcast %cst_97 : f32 to vector<16x1xf32>
      %173 = arith.divf %171, %172 : vector<16x1xf32>
      %174 = arith.mulf %165, %165 : vector<16x32xf32>
      %cst_98 = arith.constant dense<0.000000e+00> : vector<16xf32>
      %175 = vector.multi_reduction <add>, %174, %cst_98 [1] : vector<16x32xf32> to vector<16xf32>
      %176 = vector.shape_cast %175 : vector<16xf32> to vector<16x1xf32>
      %cst_99 = arith.constant 3.200000e+01 : f32
      %177 = vector.broadcast %cst_99 : f32 to vector<16x1xf32>
      %178 = arith.divf %176, %177 : vector<16x1xf32>
      %179 = arith.mulf %173, %173 : vector<16x1xf32>
      %180 = arith.subf %178, %179 : vector<16x1xf32>
      %cst_100 = arith.constant 0.000000e+00 : f32
      %181 = vector.broadcast %cst_100 : f32 to vector<16x1xf32>
      %182 = arith.maximumf %180, %181 : vector<16x1xf32>
      %183 = vector.broadcast %173 : vector<16x1xf32> to vector<16x32xf32>
      %184 = arith.subf %165, %183 : vector<16x32xf32>
      %cst_101 = arith.constant 9.99999996E-13 : f32
      %185 = vector.broadcast %cst_101 : f32 to vector<16x1xf32>
      %186 = arith.addf %182, %185 : vector<16x1xf32>
      %187 = math.rsqrt %186 : vector<16x1xf32>
      %188 = vector.broadcast %187 : vector<16x1xf32> to vector<16x32xf32>
      %189 = arith.mulf %184, %188 : vector<16x32xf32>
      %190 = vector.broadcast %167 : vector<1x32xf32> to vector<16x32xf32>
      %191 = arith.mulf %189, %190 : vector<16x32xf32>
      %192 = vector.broadcast %169 : vector<1x32xf32> to vector<16x32xf32>
      %193 = arith.addf %191, %192 : vector<16x32xf32>
      %c0_102 = arith.constant 0 : index
      %c0_103 = arith.constant 0 : index
      %194 = vector.load %arg19[%c0_102, %c0_103] : memref<16x32xf32, #tpu.memory_space<vmem>>, vector<16x32xf32>
      tpu.vector_store %arg19[%c0_102, %c0_103], %193 {strides = array<i32>} : memref<16x32xf32, #tpu.memory_space<vmem>>, vector<16x32xf32>,
    } else {
    }
    %c0 = arith.constant 0 : index
    %c0_1 = arith.constant 0 : index
    %3 = vector.load %arg19[%c0, %c0_1] : memref<16x32xf32, #tpu.memory_space<vmem>>, vector<16x32xf32>
    %c0_2 = arith.constant 0 : index
    %c0_3 = arith.constant 0 : index
    %c0_4 = arith.constant 0 : index
    %4 = vector.load %arg3[%c0_2, %c0_3, %c0_4] : memref<1x2x8xf32, #tpu.memory_space<vmem>>, vector<1x2x8xf32>
    %5 = vector.shape_cast %4 : vector<1x2x8xf32> to vector<2x8xf32>
    %6 = vector.shape_cast %5 : vector<2x8xf32> to vector<2x1x8xf32>
    %7 = arith.truncf %3 : vector<16x32xf32> to vector<16x32xbf16>
    %c0_5 = arith.constant 0 : index
    %c0_6 = arith.constant 0 : index
    %c0_7 = arith.constant 0 : index
    %c0_8 = arith.constant 0 : index
    %8 = vector.load %arg6[%c0_5, %c0_6, %c0_7, %c0_8] : memref<1x1x32x96xbf16, #tpu.memory_space<vmem>>, vector<1x1x32x96xbf16>
    %9 = vector.shape_cast %8 : vector<1x1x32x96xbf16> to vector<32x96xbf16>
    %cst = arith.constant dense<0.000000e+00> : vector<16x96xf32>
    %10 = tpu.matmul %7, %9, %cst {dimension_numbers = #tpu.dot_dimension_numbers<[1], [0], [0], [1], [0, 0, 1, 1], [], []>} : vector<16x32xbf16>, vector<32x96xbf16>, vector<16x96xf32> -> vector<16x96xf32>
    %c0_9 = arith.constant 0 : index
    %c0_10 = arith.constant 0 : index
    %c0_11 = arith.constant 0 : index
    %c0_12 = arith.constant 0 : index
    %11 = vector.load %arg7[%c0_9, %c0_10, %c0_11, %c0_12] : memref<1x1x1x96xf32, #tpu.memory_space<vmem>>, vector<1x1x1x96xf32>
    %12 = vector.shape_cast %11 : vector<1x1x1x96xf32> to vector<1x96xf32>
    %13 = vector.broadcast %12 : vector<1x96xf32> to vector<16x96xf32>
    %14 = arith.addf %10, %13 : vector<16x96xf32>
    %15 = arith.truncf %14 : vector<16x96xf32> to vector<16x96xbf16>
    %c0_13 = arith.constant 0 : index
    %c0_14 = arith.constant 0 : index
    %c0_15 = arith.constant 0 : index
    %c0_16 = arith.constant 0 : index
    %16 = vector.load %arg9[%c0_13, %c0_14, %c0_15, %c0_16] : memref<1x1x1x32xf32, #tpu.memory_space<vmem>>, vector<1x1x1x32xf32>
    %17 = vector.shape_cast %16 : vector<1x1x1x32xf32> to vector<1x32xf32>
    %18 = vector.extract_strided_slice %15 {offsets = [0, 0], sizes = [16, 16], strides = [1, 1]} : vector<16x96xbf16> to vector<16x16xbf16>
    %19 = vector.shape_cast %18 : vector<16x16xbf16> to vector<2x8x16xbf16>
    %20 = vector.extract_strided_slice %15 {offsets = [0, 32], sizes = [16, 16], strides = [1, 1]} : vector<16x96xbf16> to vector<16x16xbf16>
    %21 = vector.shape_cast %20 : vector<16x16xbf16> to vector<2x8x16xbf16>
    %22 = vector.extract_strided_slice %15 {offsets = [0, 64], sizes = [16, 16], strides = [1, 1]} : vector<16x96xbf16> to vector<16x16xbf16>
    %23 = vector.shape_cast %22 : vector<16x16xbf16> to vector<2x8x16xbf16>
    "tpu.trace_start"() <{level = 10 : i32, message = "bqd,bkd->bqk"}> : () -> ()
    %cst_17 = arith.constant dense<0.000000e+00> : vector<2x8x8xf32>
    %24 = tpu.matmul %19, %21, %cst_17 {dimension_numbers = #tpu.dot_dimension_numbers<[2], [2], [1], [1], [0, 0, 0, 1, 1, 1], [0], [0]>} : vector<2x8x16xbf16>, vector<2x8x16xbf16>, vector<2x8x8xf32> -> vector<2x8x8xf32>
    "tpu.trace_stop"() : () -> ()
    %25 = vector.broadcast %6 : vector<2x1x8xf32> to vector<2x8x8xf32>
    %26 = arith.addf %24, %25 : vector<2x8x8xf32>
    %cst_18 = arith.constant dense<0xFF800000> : vector<2x8xf32>
    %27 = vector.multi_reduction <maximumf>, %26, %cst_18 [2] : vector<2x8x8xf32> to vector<2x8xf32>
    %28 = vector.shape_cast %27 : vector<2x8xf32> to vector<2x8x1xf32>
    %29 = vector.broadcast %28 : vector<2x8x1xf32> to vector<2x8x8xf32>
    %30 = arith.subf %26, %29 : vector<2x8x8xf32>
    %31 = math.exp %30 : vector<2x8x8xf32>
    %cst_19 = arith.constant dense<0.000000e+00> : vector<2x8xf32>
    %32 = vector.multi_reduction <add>, %31, %cst_19 [2] : vector<2x8x8xf32> to vector<2x8xf32>
    %33 = vector.shape_cast %32 : vector<2x8xf32> to vector<2x8x1xf32>
    %34 = tpu.reciprocal %33 {approx = true} : vector<2x8x1xf32> -> vector<2x8x1xf32>
    %35 = vector.broadcast %34 : vector<2x8x1xf32> to vector<2x8x8xf32>
    %36 = arith.mulf %31, %35 : vector<2x8x8xf32>
    %37 = arith.truncf %36 : vector<2x8x8xf32> to vector<2x8x8xbf16>
    "tpu.trace_start"() <{level = 10 : i32, message = "bqk,bkd->bqd"}> : () -> ()
    %cst_20 = arith.constant dense<0.000000e+00> : vector<2x8x16xf32>
    %38 = tpu.matmul %37, %23, %cst_20 {dimension_numbers = #tpu.dot_dimension_numbers<[2], [1], [1], [2], [0, 0, 0, 1, 1, 2], [0], [0]>} : vector<2x8x8xbf16>, vector<2x8x16xbf16>, vector<2x8x16xf32> -> vector<2x8x16xf32>
    "tpu.trace_stop"() : () -> ()
    %39 = vector.shape_cast %38 : vector<2x8x16xf32> to vector<16x16xf32>
    %40 = arith.truncf %39 : vector<16x16xf32> to vector<16x16xbf16>
    %c0_21 = arith.constant 0 : index
    %c0_22 = arith.constant 0 : index
    %c0_23 = arith.constant 0 : index
    %c0_24 = arith.constant 0 : index
    %41 = vector.load %arg8[%c0_21, %c0_22, %c0_23, %c0_24] : memref<1x1x32x32xbf16, #tpu.memory_space<vmem>>, vector<1x1x16x32xbf16>
    %42 = vector.shape_cast %41 : vector<1x1x16x32xbf16> to vector<16x32xbf16>
    %cst_25 = arith.constant dense<0.000000e+00> : vector<16x32xf32>
    %43 = tpu.matmul %40, %42, %cst_25 {dimension_numbers = #tpu.dot_dimension_numbers<[1], [0], [0], [1], [0, 0, 1, 1], [], []>} : vector<16x16xbf16>, vector<16x32xbf16>, vector<16x32xf32> -> vector<16x32xf32>
    %44 = vector.broadcast %17 : vector<1x32xf32> to vector<16x32xf32>
    %45 = arith.addf %44, %43 : vector<16x32xf32>
    %46 = vector.extract_strided_slice %15 {offsets = [0, 16], sizes = [16, 16], strides = [1, 1]} : vector<16x96xbf16> to vector<16x16xbf16>
    %47 = vector.shape_cast %46 : vector<16x16xbf16> to vector<2x8x16xbf16>
    %48 = vector.extract_strided_slice %15 {offsets = [0, 48], sizes = [16, 16], strides = [1, 1]} : vector<16x96xbf16> to vector<16x16xbf16>
    %49 = vector.shape_cast %48 : vector<16x16xbf16> to vector<2x8x16xbf16>
    %50 = vector.extract_strided_slice %15 {offsets = [0, 80], sizes = [16, 16], strides = [1, 1]} : vector<16x96xbf16> to vector<16x16xbf16>
    %51 = vector.shape_cast %50 : vector<16x16xbf16> to vector<2x8x16xbf16>
    "tpu.trace_start"() <{level = 10 : i32, message = "bqd,bkd->bqk"}> : () -> ()
    %cst_26 = arith.constant dense<0.000000e+00> : vector<2x8x8xf32>
    %52 = tpu.matmul %47, %49, %cst_26 {dimension_numbers = #tpu.dot_dimension_numbers<[2], [2], [1], [1], [0, 0, 0, 1, 1, 1], [0], [0]>} : vector<2x8x16xbf16>, vector<2x8x16xbf16>, vector<2x8x8xf32> -> vector<2x8x8xf32>
    "tpu.trace_stop"() : () -> ()
    %53 = vector.broadcast %6 : vector<2x1x8xf32> to vector<2x8x8xf32>
    %54 = arith.addf %52, %53 : vector<2x8x8xf32>
    %cst_27 = arith.constant dense<0xFF800000> : vector<2x8xf32>
    %55 = vector.multi_reduction <maximumf>, %54, %cst_27 [2] : vector<2x8x8xf32> to vector<2x8xf32>
    %56 = vector.shape_cast %55 : vector<2x8xf32> to vector<2x8x1xf32>
    %57 = vector.broadcast %56 : vector<2x8x1xf32> to vector<2x8x8xf32>
    %58 = arith.subf %54, %57 : vector<2x8x8xf32>
    %59 = math.exp %58 : vector<2x8x8xf32>
    %cst_28 = arith.constant dense<0.000000e+00> : vector<2x8xf32>
    %60 = vector.multi_reduction <add>, %59, %cst_28 [2] : vector<2x8x8xf32> to vector<2x8xf32>
    %61 = vector.shape_cast %60 : vector<2x8xf32> to vector<2x8x1xf32>
    %62 = tpu.reciprocal %61 {approx = true} : vector<2x8x1xf32> -> vector<2x8x1xf32>
    %63 = vector.broadcast %62 : vector<2x8x1xf32> to vector<2x8x8xf32>
    %64 = arith.mulf %59, %63 : vector<2x8x8xf32>
    %65 = arith.truncf %64 : vector<2x8x8xf32> to vector<2x8x8xbf16>
    "tpu.trace_start"() <{level = 10 : i32, message = "bqk,bkd->bqd"}> : () -> ()
    %cst_29 = arith.constant dense<0.000000e+00> : vector<2x8x16xf32>
    %66 = tpu.matmul %65, %51, %cst_29 {dimension_numbers = #tpu.dot_dimension_numbers<[2], [1], [1], [2], [0, 0, 0, 1, 1, 2], [0], [0]>} : vector<2x8x8xbf16>, vector<2x8x16xbf16>, vector<2x8x16xf32> -> vector<2x8x16xf32>
    "tpu.trace_stop"() : () -> ()
    %67 = vector.shape_cast %66 : vector<2x8x16xf32> to vector<16x16xf32>
    %68 = arith.truncf %67 : vector<16x16xf32> to vector<16x16xbf16>
    %c0_30 = arith.constant 0 : index
    %c0_31 = arith.constant 0 : index
    %c16 = arith.constant 16 : index
    %c0_32 = arith.constant 0 : index
    %69 = vector.load %arg8[%c0_30, %c0_31, %c16, %c0_32] : memref<1x1x32x32xbf16, #tpu.memory_space<vmem>>, vector<1x1x16x32xbf16>
    %70 = vector.shape_cast %69 : vector<1x1x16x32xbf16> to vector<16x32xbf16>
    %cst_33 = arith.constant dense<0.000000e+00> : vector<16x32xf32>
    %71 = tpu.matmul %68, %70, %cst_33 {dimension_numbers = #tpu.dot_dimension_numbers<[1], [0], [0], [1], [0, 0, 1, 1], [], []>} : vector<16x16xbf16>, vector<16x32xbf16>, vector<16x32xf32> -> vector<16x32xf32>
    %72 = arith.addf %45, %71 : vector<16x32xf32>
    %73 = arith.addf %3, %72 : vector<16x32xf32>
    %c0_34 = arith.constant 0 : index
    %c0_35 = arith.constant 0 : index
    %c0_36 = arith.constant 0 : index
    %c0_37 = arith.constant 0 : index
    %74 = vector.load %arg10[%c0_34, %c0_35, %c0_36, %c0_37] : memref<1x1x1x32xf32, #tpu.memory_space<vmem>>, vector<1x1x1x32xf32>
    %75 = vector.shape_cast %74 : vector<1x1x1x32xf32> to vector<1x32xf32>
    %c0_38 = arith.constant 0 : index
    %c0_39 = arith.constant 0 : index
    %c0_40 = arith.constant 0 : index
    %c0_41 = arith.constant 0 : index
    %76 = vector.load %arg11[%c0_38, %c0_39, %c0_40, %c0_41] : memref<1x1x1x32xf32, #tpu.memory_space<vmem>>, vector<1x1x1x32xf32>
    %77 = vector.shape_cast %76 : vector<1x1x1x32xf32> to vector<1x32xf32>
    %cst_42 = arith.constant dense<0.000000e+00> : vector<16xf32>
    %78 = vector.multi_reduction <add>, %73, %cst_42 [1] : vector<16x32xf32> to vector<16xf32>
    %79 = vector.shape_cast %78 : vector<16xf32> to vector<16x1xf32>
    %cst_43 = arith.constant 3.200000e+01 : f32
    %80 = vector.broadcast %cst_43 : f32 to vector<16x1xf32>
    %81 = arith.divf %79, %80 : vector<16x1xf32>
    %82 = arith.mulf %73, %73 : vector<16x32xf32>
    %cst_44 = arith.constant dense<0.000000e+00> : vector<16xf32>
    %83 = vector.multi_reduction <add>, %82, %cst_44 [1] : vector<16x32xf32> to vector<16xf32>
    %84 = vector.shape_cast %83 : vector<16xf32> to vector<16x1xf32>
    %cst_45 = arith.constant 3.200000e+01 : f32
    %85 = vector.broadcast %cst_45 : f32 to vector<16x1xf32>
    %86 = arith.divf %84, %85 : vector<16x1xf32>
    %87 = arith.mulf %81, %81 : vector<16x1xf32>
    %88 = arith.subf %86, %87 : vector<16x1xf32>
    %cst_46 = arith.constant 0.000000e+00 : f32
    %89 = vector.broadcast %cst_46 : f32 to vector<16x1xf32>
    %90 = arith.maximumf %88, %89 : vector<16x1xf32>
    %91 = vector.broadcast %81 : vector<16x1xf32> to vector<16x32xf32>
    %92 = arith.subf %73, %91 : vector<16x32xf32>
    %cst_47 = arith.constant 9.99999996E-13 : f32
    %93 = vector.broadcast %cst_47 : f32 to vector<16x1xf32>
    %94 = arith.addf %90, %93 : vector<16x1xf32>
    %95 = math.rsqrt %94 : vector<16x1xf32>
    %96 = vector.broadcast %95 : vector<16x1xf32> to vector<16x32xf32>
    %97 = arith.mulf %92, %96 : vector<16x32xf32>
    %98 = vector.broadcast %75 : vector<1x32xf32> to vector<16x32xf32>
    %99 = arith.mulf %97, %98 : vector<16x32xf32>
    %100 = vector.broadcast %77 : vector<1x32xf32> to vector<16x32xf32>
    %101 = arith.addf %99, %100 : vector<16x32xf32>
    %102 = arith.truncf %101 : vector<16x32xf32> to vector<16x32xbf16>
    %c0_48 = arith.constant 0 : index
    %c0_49 = arith.constant 0 : index
    %c0_50 = arith.constant 0 : index
    %c0_51 = arith.constant 0 : index
    %103 = vector.load %arg12[%c0_48, %c0_49, %c0_50, %c0_51] : memref<1x1x32x128xbf16, #tpu.memory_space<vmem>>, vector<1x1x32x128xbf16>
    %104 = vector.shape_cast %103 : vector<1x1x32x128xbf16> to vector<32x128xbf16>
    %cst_52 = arith.constant dense<0.000000e+00> : vector<16x128xf32>
    %105 = tpu.matmul %102, %104, %cst_52 {dimension_numbers = #tpu.dot_dimension_numbers<[1], [0], [0], [1], [0, 0, 1, 1], [], []>} : vector<16x32xbf16>, vector<32x128xbf16>, vector<16x128xf32> -> vector<16x128xf32>
    %c0_53 = arith.constant 0 : index
    %c0_54 = arith.constant 0 : index
    %c0_55 = arith.constant 0 : index
    %c0_56 = arith.constant 0 : index
    %106 = vector.load %arg13[%c0_53, %c0_54, %c0_55, %c0_56] : memref<1x1x1x128xf32, #tpu.memory_space<vmem>>, vector<1x1x1x128xf32>
    %107 = vector.shape_cast %106 : vector<1x1x1x128xf32> to vector<1x128xf32>
    %108 = vector.broadcast %107 : vector<1x128xf32> to vector<16x128xf32>
    %109 = arith.addf %105, %108 : vector<16x128xf32>
    %110 = arith.mulf %109, %109 : vector<16x128xf32>
    %111 = arith.mulf %109, %110 : vector<16x128xf32>
    %cst_57 = arith.constant 4.471500e-02 : f32
    %112 = vector.broadcast %cst_57 : f32 to vector<16x128xf32>
    %113 = arith.mulf %112, %111 : vector<16x128xf32>
    %114 = arith.addf %109, %113 : vector<16x128xf32>
    %cst_58 = arith.constant 0.797884583 : f32
    %115 = vector.broadcast %cst_58 : f32 to vector<16x128xf32>
    %116 = arith.mulf %115, %114 : vector<16x128xf32>
    %117 = math.tanh %116 : vector<16x128xf32>
    %cst_59 = arith.constant 1.000000e+00 : f32
    %118 = vector.broadcast %cst_59 : f32 to vector<16x128xf32>
    %119 = arith.addf %118, %117 : vector<16x128xf32>
    %cst_60 = arith.constant 5.000000e-01 : f32
    %120 = vector.broadcast %cst_60 : f32 to vector<16x128xf32>
    %121 = arith.mulf %120, %119 : vector<16x128xf32>
    %122 = arith.mulf %109, %121 : vector<16x128xf32>
    %123 = arith.truncf %122 : vector<16x128xf32> to vector<16x128xbf16>
    %c0_61 = arith.constant 0 : index
    %c0_62 = arith.constant 0 : index
    %c0_63 = arith.constant 0 : index
    %c0_64 = arith.constant 0 : index
    %124 = vector.load %arg14[%c0_61, %c0_62, %c0_63, %c0_64] : memref<1x1x128x32xbf16, #tpu.memory_space<vmem>>, vector<1x1x128x32xbf16>
    %125 = vector.shape_cast %124 : vector<1x1x128x32xbf16> to vector<128x32xbf16>
    %cst_65 = arith.constant dense<0.000000e+00> : vector<16x32xf32>
    %126 = tpu.matmul %123, %125, %cst_65 {dimension_numbers = #tpu.dot_dimension_numbers<[1], [0], [0], [1], [0, 0, 1, 1], [], []>} : vector<16x128xbf16>, vector<128x32xbf16>, vector<16x32xf32> -> vector<16x32xf32>
    %c0_66 = arith.constant 0 : index
    %c0_67 = arith.constant 0 : index
    %c0_68 = arith.constant 0 : index
    %c0_69 = arith.constant 0 : index
    %127 = vector.load %arg15[%c0_66, %c0_67, %c0_68, %c0_69] : memref<1x1x1x32xf32, #tpu.memory_space<vmem>>, vector<1x1x1x32xf32>
    %128 = vector.shape_cast %127 : vector<1x1x1x32xf32> to vector<1x32xf32>
    %129 = vector.broadcast %128 : vector<1x32xf32> to vector<16x32xf32>
    %130 = arith.addf %126, %129 : vector<16x32xf32>
    %131 = arith.addf %101, %130 : vector<16x32xf32>
    %c0_70 = arith.constant 0 : index
    %c0_71 = arith.constant 0 : index
    %c0_72 = arith.constant 0 : index
    %c0_73 = arith.constant 0 : index
    %132 = vector.load %arg16[%c0_70, %c0_71, %c0_72, %c0_73] : memref<1x1x1x32xf32, #tpu.memory_space<vmem>>, vector<1x1x1x32xf32>
    %133 = vector.shape_cast %132 : vector<1x1x1x32xf32> to vector<1x32xf32>
    %c0_74 = arith.constant 0 : index
    %c0_75 = arith.constant 0 : index
    %c0_76 = arith.constant 0 : index
    %c0_77 = arith.constant 0 : index
    %134 = vector.load %arg17[%c0_74, %c0_75, %c0_76, %c0_77] : memref<1x1x1x32xf32, #tpu.memory_space<vmem>>, vector<1x1x1x32xf32>
    %135 = vector.shape_cast %134 : vector<1x1x1x32xf32> to vector<1x32xf32>
    %cst_78 = arith.constant dense<0.000000e+00> : vector<16xf32>
    %136 = vector.multi_reduction <add>, %131, %cst_78 [1] : vector<16x32xf32> to vector<16xf32>
    %137 = vector.shape_cast %136 : vector<16xf32> to vector<16x1xf32>
    %cst_79 = arith.constant 3.200000e+01 : f32
    %138 = vector.broadcast %cst_79 : f32 to vector<16x1xf32>
    %139 = arith.divf %137, %138 : vector<16x1xf32>
    %140 = arith.mulf %131, %131 : vector<16x32xf32>
    %cst_80 = arith.constant dense<0.000000e+00> : vector<16xf32>
    %141 = vector.multi_reduction <add>, %140, %cst_80 [1] : vector<16x32xf32> to vector<16xf32>
    %142 = vector.shape_cast %141 : vector<16xf32> to vector<16x1xf32>
    %cst_81 = arith.constant 3.200000e+01 : f32
    %143 = vector.broadcast %cst_81 : f32 to vector<16x1xf32>
    %144 = arith.divf %142, %143 : vector<16x1xf32>
    %145 = arith.mulf %139, %139 : vector<16x1xf32>
    %146 = arith.subf %144, %145 : vector<16x1xf32>
    %cst_82 = arith.constant 0.000000e+00 : f32
    %147 = vector.broadcast %cst_82 : f32 to vector<16x1xf32>
    %148 = arith.maximumf %146, %147 : vector<16x1xf32>
    %149 = vector.broadcast %139 : vector<16x1xf32> to vector<16x32xf32>
    %150 = arith.subf %131, %149 : vector<16x32xf32>
    %cst_83 = arith.constant 9.99999996E-13 : f32
    %151 = vector.broadcast %cst_83 : f32 to vector<16x1xf32>
    %152 = arith.addf %148, %151 : vector<16x1xf32>
    %153 = math.rsqrt %152 : vector<16x1xf32>
    %154 = vector.broadcast %153 : vector<16x1xf32> to vector<16x32xf32>
    %155 = arith.mulf %150, %154 : vector<16x32xf32>
    %156 = vector.broadcast %133 : vector<1x32xf32> to vector<16x32xf32>
    %157 = arith.mulf %155, %156 : vector<16x32xf32>
    %158 = vector.broadcast %135 : vector<1x32xf32> to vector<16x32xf32>
    %159 = arith.addf %157, %158 : vector<16x32xf32>
    %c0_84 = arith.constant 0 : index
    %c0_85 = arith.constant 0 : index
    %160 = vector.load %arg19[%c0_84, %c0_85] : memref<16x32xf32, #tpu.memory_space<vmem>>, vector<16x32xf32>
    tpu.vector_store %arg19[%c0_84, %c0_85], %159 {strides = array<i32>} : memref<16x32xf32, #tpu.memory_space<vmem>>, vector<16x32xf32>,
    %c1_i32 = arith.constant 1 : i32
    %161 = arith.cmpi eq, %arg1, %c1_i32 : i32
    %162 = arith.extui %161 : i1 to i32
    %c0_i32_86 = arith.constant 0 : i32
    %163 = arith.cmpi ne, %162, %c0_i32_86 : i32
    scf.if %163 {
      %164 = vector.extract_strided_slice %159 {offsets = [0, 0], sizes = [1, 32], strides = [1, 1]} : vector<16x32xf32> to vector<1x32xf32>
      %165 = vector.extract_strided_slice %159 {offsets = [8, 0], sizes = [1, 32], strides = [1, 1]} : vector<16x32xf32> to vector<1x32xf32>
      %166 = tpu.concatenate %164, %165 in 0 : vector<1x32xf32>, vector<1x32xf32> -> vector<2x32xf32>
      %c0_87 = arith.constant 0 : index
      %c0_88 = arith.constant 0 : index
      %c0_89 = arith.constant 0 : index
      %167 = vector.load %arg18[%c0_87, %c0_88, %c0_89] : memref<1x2x32xf32, #tpu.memory_space<vmem>>, vector<1x2x32xf32>
      %168 = vector.shape_cast %167 : vector<1x2x32xf32> to vector<2x32xf32>
      %169 = vector.shape_cast %166 : vector<2x32xf32> to vector<1x2x32xf32>
      tpu.vector_store %arg18[%c0_87, %c0_88, %c0_89], %169 {strides = array<i32>} : memref<1x2x32xf32, #tpu.memory_space<vmem>>, vector<1x2x32xf32>,
    } else {
    }
    return
  }
  func.func @transform_0(%arg0: i32, %arg1: i32) -> (i32, i32, i32) {
    %c0_i32 = arith.constant 0 : i32
    %c0_i32_0 = arith.constant 0 : i32
    %c0_i32_1 = arith.constant 0 : i32
    return %arg0, %c0_i32, %c0_i32_0 : i32, i32, i32
  }
  func.func @transform_1(%arg0: i32, %arg1: i32) -> (i32, i32, i32) {
    %c0_i32 = arith.constant 0 : i32
    %c0_i32_0 = arith.constant 0 : i32
    %c0_i32_1 = arith.constant 0 : i32
    return %arg0, %c0_i32, %c0_i32_0 : i32, i32, i32
  }
  func.func @transform_2(%arg0: i32, %arg1: i32) -> (i32, i32, i32) {
    %c0_i32 = arith.constant 0 : i32
    %c0_i32_0 = arith.constant 0 : i32
    %c0_i32_1 = arith.constant 0 : i32
    return %arg0, %c0_i32, %c0_i32_0 : i32, i32, i32
  }
  func.func @transform_3(%arg0: i32, %arg1: i32) -> (i32, i32, i32) {
    %c0_i32 = arith.constant 0 : i32
    %c0_i32_0 = arith.constant 0 : i32
    %c0_i32_1 = arith.constant 0 : i32
    return %arg0, %c0_i32, %c0_i32_0 : i32, i32, i32
  }
  func.func @transform_4(%arg0: i32, %arg1: i32) -> (i32, i32, i32, i32) {
    %c0_i32 = arith.constant 0 : i32
    %c0_i32_0 = arith.constant 0 : i32
    %c0_i32_1 = arith.constant 0 : i32
    return %arg0, %arg1, %c0_i32, %c0_i32_0 : i32, i32, i32, i32
  }
  func.func @transform_5(%arg0: i32, %arg1: i32) -> (i32, i32, i32, i32) {
    %c0_i32 = arith.constant 0 : i32
    %c0_i32_0 = arith.constant 0 : i32
    %c0_i32_1 = arith.constant 0 : i32
    return %arg0, %arg1, %c0_i32, %c0_i32_0 : i32, i32, i32, i32
  }
  func.func @transform_6(%arg0: i32, %arg1: i32) -> (i32, i32, i32, i32) {
    %c0_i32 = arith.constant 0 : i32
    %c0_i32_0 = arith.constant 0 : i32
    %c0_i32_1 = arith.constant 0 : i32
    return %arg0, %arg1, %c0_i32, %c0_i32_0 : i32, i32, i32, i32
  }
  func.func @transform_7(%arg0: i32, %arg1: i32) -> (i32, i32, i32, i32) {
    %c0_i32 = arith.constant 0 : i32
    %c0_i32_0 = arith.constant 0 : i32
    %c0_i32_1 = arith.constant 0 : i32
    return %arg0, %arg1, %c0_i32, %c0_i32_0 : i32, i32, i32, i32
  }
  func.func @transform_8(%arg0: i32, %arg1: i32) -> (i32, i32, i32, i32) {
    %c0_i32 = arith.constant 0 : i32
    %c0_i32_0 = arith.constant 0 : i32
    %c0_i32_1 = arith.constant 0 : i32
    return %arg0, %arg1, %c0_i32, %c0_i32_0 : i32, i32, i32, i32
  }
  func.func @transform_9(%arg0: i32, %arg1: i32) -> (i32, i32, i32, i32) {
    %c0_i32 = arith.constant 0 : i32
    %c0_i32_0 = arith.constant 0 : i32
    %c0_i32_1 = arith.constant 0 : i32
    return %arg0, %arg1, %c0_i32, %c0_i32_0 : i32, i32, i32, i32
  }
  func.func @transform_10(%arg0: i32, %arg1: i32) -> (i32, i32, i32, i32) {
    %c0_i32 = arith.constant 0 : i32
    %c0_i32_0 = arith.constant 0 : i32
    %c0_i32_1 = arith.constant 0 : i32
    return %arg0, %arg1, %c0_i32, %c0_i32_0 : i32, i32, i32, i32
  }
  func.func @transform_11(%arg0: i32, %arg1: i32) -> (i32, i32, i32, i32) {
    %c0_i32 = arith.constant 0 : i32
    %c0_i32_0 = arith.constant 0 : i32
    %c0_i32_1 = arith.constant 0 : i32
    return %arg0, %arg1, %c0_i32, %c0_i32_0 : i32, i32, i32, i32
  }
  func.func @transform_12(%arg0: i32, %arg1: i32) -> (i32, i32, i32, i32) {
    %c0_i32 = arith.constant 0 : i32
    %c0_i32_0 = arith.constant 0 : i32
    %c0_i32_1 = arith.constant 0 : i32
    return %arg0, %arg1, %c0_i32, %c0_i32_0 : i32, i32, i32, i32
  }
  func.func @transform_13(%arg0: i32, %arg1: i32) -> (i32, i32, i32, i32) {
    %c0_i32 = arith.constant 0 : i32
    %c0_i32_0 = arith.constant 0 : i32
    %c0_i32_1 = arith.constant 0 : i32
    return %arg0, %arg1, %c0_i32, %c0_i32_0 : i32, i32, i32, i32
  }
  func.func @transform_14(%arg0: i32, %arg1: i32) -> (i32, i32, i32, i32) {
    %c0_i32 = arith.constant 0 : i32
    %c0_i32_0 = arith.constant 0 : i32
    %c0_i32_1 = arith.constant 0 : i32
    return %arg0, %arg1, %c0_i32, %c0_i32_0 : i32, i32, i32, i32
  }
  func.func @transform_15(%arg0: i32, %arg1: i32) -> (i32, i32, i32, i32) {
    %c0_i32 = arith.constant 0 : i32
    %c0_i32_0 = arith.constant 0 : i32
    %c0_i32_1 = arith.constant 0 : i32
    return %arg0, %arg1, %c0_i32, %c0_i32_0 : i32, i32, i32, i32
  }
  func.func @transform_16(%arg0: i32, %arg1: i32) -> (i32, i32, i32) {
    %c0_i32 = arith.constant 0 : i32
    %c0_i32_0 = arith.constant 0 : i32
    %c0_i32_1 = arith.constant 0 : i32
    return %arg0, %c0_i32, %c0_i32_0 : i32, i32, i32
  }
}

</mosaic_0001>

<bundles_post_ra>
// kernel: dpr_combined_forward.1
= control target key start
LH: loop header
LB: loop body
LE: loop exit
PB: predicated region body
PF: predicated region fallthrough
CT: control target
= control target key end

     0   :  { %s2713_s21 = smov 0   ;;  %s2715_s22 = smov 0   ;;  %s3048_s0 = inlined_call_operand.vmem [shape: f32[2,16,32], index: 0, kind: input, shape index: {}]   ;;  %s3049_s1 = inlined_call_operand.vmem [shape: f32[2,2,8], index: 1, kind: input, shape index: {}]   ;;  %s3050_s2 = inlined_call_operand.vmem [shape: f32[2,1,32], index: 2, kind: input, shape index: {}]   ;;  %s3051_s3 = inlined_call_operand.vmem [shape: f32[2,1,32], index: 3, kind: input, shape index: {}]   ;;  %s3052_s4 = inlined_call_operand.vmem [shape: bf16[2,2,32,96], index: 4, kind: input, shape index: {}]   ;;  %s3053_s5 = inlined_call_operand.vmem [shape: f32[2,2,1,96], index: 5, kind: input, shape index: {}]   ;;  %s3054_s6 = inlined_call_operand.vmem [shape: bf16[2,2,32,32], index: 6, kind: input, shape index: {}]   ;;  %s3055_s7 = inlined_call_operand.vmem [shape: f32[2,2,1,32], index: 7, kind: input, shape index: {}]   ;;  %s3056_s8 = inlined_call_operand.vmem [shape: f32[2,2,1,32], index: 8, kind: input, shape index: {}]   ;;  %s3057_s9 = inlined_call_operand.vmem [shape: f32[2,2,1,32], index: 9, kind: input, shape index: {}]   ;;  %s3058_s10 = inlined_call_operand.vmem [shape: bf16[2,2,32,128], index: 10, kind: input, shape index: {}]   ;;  %s3059_s11 = inlined_call_operand.vmem [shape: f32[2,2,1,128], index: 11, kind: input, shape index: {}]   ;;  %s3060_s12 = inlined_call_operand.vmem [shape: bf16[2,2,128,32], index: 12, kind: input, shape index: {}]   ;;  %s3061_s13 = inlined_call_operand.vmem [shape: f32[2,2,1,32], index: 13, kind: input, shape index: {}]   ;;  %s3062_s14 = inlined_call_operand.vmem [shape: f32[2,2,1,32], index: 14, kind: input, shape index: {}]   ;;  %s3063_s15 = inlined_call_operand.vmem [shape: f32[2,2,1,32], index: 15, kind: input, shape index: {}]   ;;  %s3064_s16 = inlined_call_operand.vmem [shape: f32[2,2,32], index: 16, kind: output, shape index: {}]  }
   0x1   :  { %3071 = sst [smem:[#allocation11_spill]] %s3048_s0  ;;  %s2717_s23 = smov 0  }
   0x2   :  { %3072 = sst [smem:[#allocation12_spill]] %s3049_s1  ;;  %s2719_s24 = smov 0  }
   0x3   :  { %3073 = sst [smem:[#allocation13_spill]] %s3052_s4  ;;  %s2721_s25 = smov 0  }
   0x4   :  { %3074 = sst [smem:[#allocation14_spill]] %s3054_s6 }
   0x5   :  { %3075 = sst [smem:[#allocation15_spill]] %s3055_s7 }
   0x6   :  { %3076 = sst [smem:[#allocation16_spill]] %s3056_s8 }
   0x7   :  { %3077 = sst [smem:[#allocation17_spill]] %s3057_s9 }
   0x8   :  { %3078 = sst [smem:[#allocation18_spill]] %s3058_s10 }
   0x9   :  { %3079 = sst [smem:[#allocation19_spill]] %s3059_s11 }
   0xa   :  { %3080 = sst [smem:[#allocation20_spill]] %s3060_s12 }
   0xb   :  { %3081 = sst [smem:[#allocation21_spill]] %s3061_s13 }
   0xc   :  { %3082 = sst [smem:[#allocation22_spill]] %s3062_s14 }
   0xd   :  { %3083 = sst [smem:[#allocation23_spill]] %s3063_s15 }
   0xe   :  { %3084 = sst [smem:[#allocation24_spill]] %s3064_s16 }
   0xf LB: > { %3085 = sst [smem:[#allocation3_spill]] %s2602_s21  ;;  %s35_s26 = sadd.s32 1, %s2610_s23  ;;  %s2618_s25 = sphi %s2721_s25, %s26_s25   ;;  %s2614_s24 = sphi %s2719_s24, %s3132_s24   ;;  %s2610_s23 = sphi %s2717_s23, %s3131_s23   ;;  %s2606_s22 = sphi %s2715_s22, %s3130_s22   ;;  %s2602_s21 = sphi %s2713_s21, %s3129_s21  }
  0x10   : > { %3086 = sst [smem:[#allocation4_spill]] %s2610_s23  ;;  %s38_s27 = sadd.s32 1, %s2614_s24 }
  0x11   : > { %3087 = sst [smem:[#allocation5_spill]] %s2614_s24  ;;  %p36_p0 = scmp.ge.s32.totalorder %s35_s26, 2 }
  0x12   : > { %3088 = sst [smem:[#allocation6_spill]] %s2618_s25  ;;  %p2284_p1 = scmp.ge.s32.totalorder %s2618_s25, 1 }
  0x13   : > { %p675_p2 = scmp.lt.s32.totalorder %s2618_s25, 5  ;;  %s3134_s26 = smov (%p36_p0, %s35_s26), 0 }
  0x14   : > { %3089 = sst [smem:[#allocation7_spill]] %s3134_s26  ;;  %s3136_s27 = smov (!%p36_p0, %s38_s27), %s2614_s24 }
  0x15   : > { %p676_p3 = pnand %p2284_p1, %p675_p2  ;;  %p40_p4 = scmp.ge.s32.totalorder %s3136_s27, 2 }
  0x17   : > { %s3138_s27 = smov (%p40_p4, %s3136_s27), 0  ;;  %679 = sbr.rel (%p676_p3) target bundleno = 2971 (0xb9b), region = 84 }
  0x18   : > { %3090 = sst [smem:[#allocation8_spill]] %s3138_s27 }
  0x1c   : > { %p826_p5 = scmp.lt.s32.totalorder %s2606_s22, 1  ;;  %p843_p6 = scmp.lt.s32.totalorder %s2602_s21, 1 }
  0x1d   : > { %s3091_s18 = sld [smem:[#allocation11_spill]] }
  0x1e   : > { %s3140_s22 = smov (!%p826_p5, %s2606_s22), 1  ;;  %s3093_s4 = sld [smem:[#allocation13_spill]] }
  0x1f   : > { %s844_s28 = scalar_select %p843_p6, %s2602_s21, 1 }
  0x20   : > { %s2352_s29 = sshll.u32 %s3140_s22, 4  ;;  %s2751_s30 = sshll.u32 %s3140_s22, 1 }
  0x21   : > { %s2288_s15 = sshll.u32 %s844_s28, 2  ;;  %s2289_s14 = sshll.u32 %s3140_s22, 3 }
  0x22   : > { %s847_s13 = sadd.s32 %s2289_s14, %s2288_s15  ;;  %s2770_s0 = sadd.s32 %s2751_s30, %s844_s28 }
  0x23   : > { %s830_s19 = scalar_lea.vmem %s3091_s18, %s2352_s29  ;;  %s2290_s23 = sshll.u32 %s847_s13, 2 }
  0x24   : > { %s2779_s14 = scalar_lea.vmem %s3093_s4, %s2290_s23  ;;  %s3094_s6 = sld [smem:[#allocation14_spill]] }
  0x25   : > { %s3099_s10 = sld [smem:[#allocation18_spill]]  ;;  %s2303_s26 = sshll.u32 %s3140_s22, 5 }
  0x26   : > { %s3102_s7 = sld [smem:[#allocation21_spill]] }
  0x27   : > { %s3103_s12 = sld [smem:[#allocation22_spill]] }
  0x28   : > { %s3105_s15 = sld [smem:[#allocation20_spill]] }
  0x29   : > { %s3106_s11 = sld [smem:[#allocation24_spill]] }
  0x2a   : > { %s2784_s18 = scalar_lea.vmem %s3094_s6, %s2290_s23 }
  0x2b   : > { %3095 = sst [smem:[#allocation9_spill]] %s2784_s18  ;;  %s2801_s1 = scalar_lea.vmem %s3099_s10, %s2290_s23 }
  0x2c   : > { %3100 = sst [smem:[#allocation10_spill]] %s2801_s1  ;;  %s2302_s18 = sshll.u32 %s844_s28, 4 }
  0x2d   : > { %s918_s25 = scalar_lea.vmem %s3102_s7, %s2770_s0  ;;  %s909_s13 = sadd.s32 %s2303_s26, %s2302_s18 }
  0x2e   : > { %s925_s27 = scalar_lea.vmem %s3103_s12, %s2770_s0  ;;  %s2304_s16 = sshll.u32 %s909_s13, 2 }
  0x2f   : > { %s3104_s23 = sld [smem:[#allocation23_spill]]  ;;  %s2823_s17 = scalar_lea.vmem %s3105_s15, %s2304_s16 }
  0x30   : > { %s936_s21 = scalar_lea.vmem %s3106_s11, %s2751_s30  ;;  %s3107_s7 = sld [smem:[#allocation3_spill]] }
  0x35   : > { %s932_s29 = scalar_lea.vmem %s3104_s23, %s2770_s0 }
  0x36   : > { %p2309_p7 = scmp.ne.s32.totalorder %s3107_s7, 0 }
  0x37   : > { %s3108_s8 = scalar_lea.vmem (!%p2309_p7), %s3050_s2, %s3140_s22  ;;  %s3109_s11 = scalar_lea.vmem (!%p2309_p7), %s3051_s3, %s3140_s22 }
  0x38   : > { %941 = sbr.rel (%p2309_p7) target bundleno = 236 (0xec), region = 88 }
  0x3d   : > { %v942_v0 = vld [vmem:[%s830_s19] sm:$0xff]  ;;  %vm946_vm0 = vcmask 261120   ;;  %v943_v1 = vld [vmem:[%s830_s19 + $0x8] sm:$0xff] }
  0x3e   : > { %v947_v2 = vsel %vm946_vm0, %v942_v0, 0.0  ;;  %v956_v3 = vmul.f32 %v942_v0, %v942_v0  ;;  %v957_v4 = vmul.f32 %v943_v1, %v943_v1  ;;  %v950_v6 = vsel %vm946_vm0, %v943_v1, 0.0  ;;  %v2310_v26 = vld [vmem:[%s3108_s8] ss:$0 sm:$0xff] }
  0x3f   : > { %948 = vadd.xlane.f32.xlu0 %v947_v2  ;;  %v2311_v28 = vld [vmem:[%s3109_s11] ss:$0 sm:$0xff] }
  0x40   : > { %v958_v5 = vsel %vm946_vm0, %v956_v3, 0.0  ;;  %v961_v7 = vsel %vm946_vm0, %v957_v4, 0.0 }
  0x41   : > { %959 = vadd.xlane.f32.xlu1 %v958_v5 }
  0x43   : > { %951 = vadd.xlane.f32.xlu0 %v950_v6 }
  0x45   : > { %962 = vadd.xlane.f32.xlu1 %v961_v7 }
  0xc8   : > { %v949_v8 = vpop.xlane.xlu0 %948 }
  0xc9   : > { %v954_v9 = vmul.f32 0.03125, %v949_v8 }
  0xca   : > { %v960_v10 = vpop.xlane.xlu1 %959 }
  0xcb   : > { %v966_v11 = vmul.f32 %v954_v9, %v954_v9  ;;  %v964_v12 = vmul.f32 0.03125, %v960_v10  ;;  %v972_v24 = vsub.f32 %v942_v0, %v954_v9 }
  0xcc   : > { %v952_v13 = vpop.xlane.xlu0 %951 }
  0xcd   : > { %v968_v14 = vsub.f32 %v964_v12, %v966_v11  ;;  %v955_v15 = vmul.f32 0.03125, %v952_v13 }
  0xce   : > { %v963_v16 = vpop.xlane.xlu1 %962 }
  0xcf   : > { %v970_v17 = vmax.f32 %v968_v14, 0.0  ;;  %v967_v18 = vmul.f32 %v955_v15, %v955_v15  ;;  %v965_v19 = vmul.f32 0.03125, %v963_v16  ;;  %v973_v30 = vsub.f32 %v943_v1, %v955_v15 }
  0xd1   : > { %v974_v20 = vadd.f32 1e-12, %v970_v17  ;;  %v969_v21 = vsub.f32 %v965_v19, %v967_v18 }
  0xd3   : > { %2534 = vrsqrt.f32 %v974_v20  ;;  %v971_v22 = vmax.f32 %v969_v21, 0.0 }
  0xd5   : > { %v975_v23 = vadd.f32 1e-12, %v971_v22 }
  0xd7   : > { %2536 = vrsqrt.f32 %v975_v23 }
  0xe0   : > { %v2535_v25 = vpop.eup %2534 }
  0xe1   : > { %v978_v27 = vmul.f32 %v2535_v25, %v972_v24 }
  0xe3   : > { %v986_v29 = vmul.f32 %v2310_v26, %v978_v27 }
  0xe4   : > { %v2537_v31 = vpop.eup %2536 }
  0xe5   : > { %v994_v32 = vadd.f32 %v2311_v28, %v986_v29  ;;  %v979_v33 = vmul.f32 %v2537_v31, %v973_v30 }
  0xe7   : > { %996 = vst.msk [vmem:[#allocation2] sm:$0xff] %vm946_vm0, %v994_v32  ;;  %v987_v34 = vmul.f32 %v2310_v26, %v979_v33 }
  0xe9   : > { %v995_v35 = vadd.f32 %v2311_v28, %v987_v34 }
  0xeb   : > { %997 = vst.msk [vmem:[#allocation2 + $0x8] sm:$0xff] %vm946_vm0, %v995_v35 }
  0xec PF: > { %v2538_v36 = vld [vmem:[%s2779_s14 + $0x8] sm:$0xff]   ;;  %v2620_v37 = vmov 0.0   ;;  %v2539_v38 = vld [vmem:[%s2779_s14] sm:$0xff]   ;;  %vm2621_vm1 = vmmov 0   ;;  %vm1048_vm2 = vcmask 261120   ;;  %s3110_s14 = scalar_lea.vmem %s3053_s5, %s2770_s0  ;;  %s2622_s18 = smov 96   ;;  %v1013_v57 = vlaneseq }
  0xed   : > { %2390 = vmatprep.subr.bf16.mxu1 %v2620_v37  ;;  %2416 = vmatprep.subr.bf16.mxu0 %v2620_v37  ;;  %v2313_v42 = vld [vmem:[%s3110_s14] ss:$0 sm:$0xff]  ;;  %vm1112_vm3 = vcmask 130048   ;;  %v2623_v55 = vmov 1966171168   ;;  %s3111_s26 = sld [smem:[#allocation12_spill]] }
  0xee   : > { %2391 = vmatpush3.bf16.msra.mxu1 %v2538_v36  ;;  %2394 = vmatprep.mubr.msk.bf16.mxu1 %vm2621_vm1, %v2620_v37  ;;  %v2852_v39 = vld [vmem:[#allocation2] sm:$0xff]  ;;  %v1011_v56 = vunpack.c.l.s4 %v2623_v55  ;;  %v1014_v59 = vshrl.u32 %v1013_v57, 7  ;;  %vm1207_vm4 = vcmask 64512   ;;  %s2624_s13 = smov 64   ;;  %vm1237_vm5 = vcmask 1043456   ;;  %s2625_s12 = smov 112  }
  0xef   : > { %2392 = vmatprep.subr.bf16.mxu1 %v2620_v37  ;;  %2418 = vmatprep.mubr.msk.bf16.mxu0 %vm2621_vm1, %v2620_v37  ;;  %s2626_s4 = smov 80   ;;  %s3113_s23 = sld [smem:[#allocation9_spill]] }
  0xf0   : > { %v1012_v58 = vunpack.c.0.s8 %v1011_v56  ;;  %v1102_v63 = vsub.s32 0, %v1014_v59  ;;  %s2627_s15 = smov 48   ;;  %s3114_s1 = sld [smem:[#allocation15_spill]] }
  0xf1   : > { %s3116_s8 = sld [smem:[#allocation10_spill]] }
  0xf2   : > { %v2854_v40 = vld [vmem:[#allocation2 + $0x8] sm:$0xff]  ;;  %2393 = vmatpush3.bf16.msra.mxu1 %v2539_v38  ;;  %v1015_v60 = vsub.s32 %v1012_v58, %v1014_v59  ;;  %s3117_s11 = sld [smem:[#allocation16_spill]] }
  0xf3   : > { %v1024_v41 = vpack.c.bf16 %v2854_v40, %v2852_v39  ;;  %2398 = vmatprep.subr.bf16.mxu1 %v2620_v37  ;;  %s3112_s20 = scalar_lea.vmem %s3111_s26, %s2751_s30 }
  0xf4   : > { %v2312_v61 = vld.sshfl [vmem:[%s3112_s20] sm:$0x11 pattern:$0x75316420]  ;;  %s3121_s20 = sld [smem:[#allocation19_spill]] }
  0xf5   : > { %2395 = vmatmul.mubr.msk.bf16.vlgmr.msra.gmra.mxu1 %vm1048_vm2, %v1024_v41  ;;  %v1016_v62 = vrot.slane %v2312_v61, %v1015_v60  ;;  %v1009_v1 = vcombine.high %v2312_v61, %v2312_v61 }
  0xf6   : > { %2400 = vmatprep.mubr.msk.bf16.mxu1 %vm2621_vm1, %v2620_v37  ;;  %s3115_s6 = scalar_lea.vmem %s3114_s1, %s2770_s0 }
  0xf7   : > { %v2893_v0 = vrot.slane %v1016_v62, %v1102_v63  ;;  %v1023_v4 = vrot.slane %v1009_v1, %v1015_v60 }
  0xf8   : > { %s3118_s22 = scalar_lea.vmem %s3117_s11, %s2770_s0 }
  0xf9   : > { %v2897_v8 = vrot.slane %v1023_v4, %v1102_v63 }
 0x1b5   : > { %v1086_v43 = vpop.f32.mrf.mxu1 }
 0x1b6   : > { %v1087_v44 = vadd.f32 %v2313_v42, %v1086_v43 }
 0x1b7   : > { %v2396_v45 = vpop.f32.mrf.mxu1 }
 0x1b8   : > { %v2870_v46 = vpack.c.bf16 %v1087_v44, %v1087_v44  ;;  %v2540_v44 = vld [vmem:[%s3113_s23] sm:$0xff]  }
 0x1b9   : > { %v1089_v47 = vpop.f32.mrf.mxu1 }
 0x1ba   : > { %v1090_v48 = vadd.f32 %v2313_v42, %v1089_v47  ;;  %1110 = vrot.lane.b32.xlu0 %v2870_v46, %s2622_s18 }
 0x1bb   : > { %v2397_v49 = vpop.f32.mrf.mxu1 }
 0x1bc   : > { %v2873_v50 = vpack.c.bf16 %v1090_v48, %v1090_v48 }
 0x1be   : > { %1159 = vrot.lane.b32.xlu0 %v2873_v50, %s2622_s18  ;;  %s3119_s18 = sld [smem:[#allocation17_spill]] }
 0x1c4   : > { %s3120_s24 = scalar_lea.vmem %s3119_s18, %s2770_s0 }
 0x22c   : > { %v1111_v51 = vpop.permute.xlu0 %1110 }
 0x22d   : > { %v1117_v52 = vsel %vm1112_vm3, %v1111_v51, 0 }
 0x22e   : > { %2399 = vmatpush3.bf16.xpose.msra.mxu1 %v1117_v52 }
 0x22f   : > { %2404 = vmatprep.subr.bf16.mxu1 %v2620_v37 }
 0x230   : > { %v1160_v53 = vpop.permute.xlu0 %1159 }
 0x231   : > { %v1165_v54 = vsel %vm1112_vm3, %v1160_v53, 0 }
 0x235   : > { %2401 = vmatmul.mubr.msk.bf16.vlgmr.msra.gmra.mxu1 %vm1112_vm3, %v2870_v46 }
 0x236   : > { %2405 = vmatpush3.bf16.xpose.msra.mxu1 %v1165_v54  ;;  %2406 = vmatprep.mubr.msk.bf16.mxu1 %vm2621_vm1, %v2620_v37 }
 0x237   : > { %2410 = vmatprep.subr.bf16.mxu1 %v2620_v37 }
 0x23d   : > { %2407 = vmatmul.mubr.msk.bf16.vlgmr.msra.gmra.mxu1 %vm1112_vm3, %v2873_v50 }
 0x23e   : > { %2412 = vmatprep.mubr.msk.bf16.mxu1 %vm2621_vm1, %v2620_v37 }
 0x2f5   : > { %v1153_v2 = vpop.f32.mrf.mxu1 }
 0x2f6   : > { %v1154_v3 = vadd.f32 %v1153_v2, %v2893_v0 }
 0x2f7   : > { %v2402_v5 = vpop.f32.mrf.mxu1 }
 0x2f8   : > { %v1208_v6 = vsel %vm1207_vm4, %v1154_v3, -inf }
 0x2f9   : > { %1209 = vmax.xlane.f32.xlu1 %v1208_v6  ;;  %v1156_v7 = vpop.f32.mrf.mxu1 }
 0x2fb   : > { %v2403_v9 = vpop.f32.mrf.mxu1 }
 0x2fd   : > { %v1201_v10 = vpop.f32.mrf.mxu1 }
 0x2fe   : > { %v1202_v11 = vadd.f32 %v1201_v10, %v2897_v8 }
 0x2ff   : > { %v2408_v12 = vpop.f32.mrf.mxu1 }
 0x300   : > { %v1211_v13 = vsel %vm1207_vm4, %v1202_v11, -inf }
 0x301   : > { %1212 = vmax.xlane.f32.xlu1 %v1211_v13  ;;  %v1204_v14 = vpop.f32.mrf.mxu1 }
 0x303   : > { %v2409_v15 = vpop.f32.mrf.mxu1 }
 0x312   : > { %1232 = vrot.lane.b32.xlu1 %v2870_v46, %s2624_s13 }
 0x382   : > { %v1210_v16 = vpop.xlane.xlu1 %1209 }
 0x383   : > { %v1214_v17 = vsub.f32 %v1154_v3, %v1210_v16 }
 0x385   : > { %v1216_v18 = vmul.f32 1.442695, %v1214_v17 }
 0x387   : > { %2552 = vpow2.f32 %v1216_v18 }
 0x38a   : > { %v1213_v19 = vpop.xlane.xlu1 %1212 }
 0x38b   : > { %v1215_v20 = vsub.f32 %v1202_v11, %v1213_v19 }
 0x38d   : > { %v1218_v21 = vmul.f32 1.442695, %v1215_v20 }
 0x38e   : > { %v1233_v22 = vpop.permute.xlu1 %1232 }
 0x38f   : > { %2554 = vpow2.f32 %v1218_v21  ;;  %v1239_v23 = vsel %vm1237_vm5, %v1233_v22, 0 }
 0x390   : > { %2411 = vmatpush3.bf16.msra.mxu1 %v1239_v23 }
 0x391   : > { %2422 = vmatprep.subr.bf16.mxu1 %v2620_v37 }
 0x394   : > { %v2553_v24 = vpop.eup %2552 }
 0x395   : > { %v1220_v25 = vsel %vm1207_vm4, %v2553_v24, 0.0 }
 0x396   : > { %1221 = vadd.xlane.f32.xlu0 %v1220_v25 }
 0x39c   : > { %v2555_v26 = vpop.eup %2554 }
 0x39d   : > { %v1223_v27 = vsel %vm1207_vm4, %v2555_v26, 0.0 }
 0x39e   : > { %1224 = vadd.xlane.f32.xlu1 %v1223_v27 }
 0x3ac   : > { %1390 = vrot.lane.b32.xlu0 %v2870_v46, %s2625_s12 }
 0x3af   : > { %1281 = vrot.lane.b32.xlu1 %v2873_v50, %s2624_s13  ;;  %s3122_s13 = scalar_lea.vmem %s3121_s20, %s2770_s0 }
 0x3b3   : > { %1392 = vrot.lane.b32.xlu1 %v2870_v46, %s2626_s4 }
 0x3b7   : > { %1442 = vrot.lane.b32.xlu1 %v2873_v50, %s2626_s4 }
 0x3bb   : > { %1440 = vrot.lane.b32.xlu1 %v2873_v50, %s2625_s12 }
 0x41f   : > { %v1222_v28 = vpop.xlane.xlu0 %1221 }
 0x420   : > { %2556 = vrcp.f32 %v1222_v28 }
 0x423   : > { %v1391_v43 = vpop.permute.xlu0 %1390 }
 0x427   : > { %v1225_v29 = vpop.xlane.xlu1 %1224 }
 0x428   : > { %2558 = vrcp.f32 %v1225_v29 }
 0x42b   : > { %v1282_v30 = vpop.permute.xlu1 %1281 }
 0x42c   : > { %v1287_v31 = vsel %vm1237_vm5, %v1282_v30, 0 }
 0x42d   : > { %v2557_v32 = vpop.eup %2556  ;;  %2417 = vmatpush3.bf16.msra.mxu0 %v1287_v31  ;;  %v2541_v31 = vld [vmem:[%s3113_s23 + $0x8] sm:$0xff]  }
 0x42e   : > { %v1228_v33 = vmul.f32 %v2557_v32, %v2553_v24  ;;  %2428 = vmatprep.subr.bf16.mxu0 %v2620_v37 }
 0x42f   : > { %v1393_v38 = vpop.permute.xlu1 %1392 }
 0x430   : > { %v1230_v34 = vpack.c.bf16 %v1228_v33, %v1228_v33  ;;  %v1398_v42 = vsel %vm1112_vm3, %v1393_v38, 0 }
 0x432   : > { %2413 = vmatmul.mubr.msk.bf16.vlgmr.msra.gmra.mxu1 %vm1207_vm4, %v1230_v34 }
 0x433   : > { %2424 = vmatprep.mubr.msk.bf16.mxu1 %vm2621_vm1, %v2620_v37  ;;  %2423 = vmatpush3.bf16.msra.mxu1 %v2540_v44  ;;  %v1443_v51 = vpop.permute.xlu1 %1442  ;;  %v2325_v44 = vld [vmem:[%s3115_s6] ss:$0 sm:$0xff]  ;;  %s3126_s6 = sld [smem:[#allocation3_spill]] }
 0x434   : > { %2434 = vmatprep.subr.bf16.mxu1 %v2620_v37  ;;  %v1448_v55 = vsel %vm1112_vm3, %v1443_v51, 0 }
 0x435   : > { %v2559_v35 = vpop.eup %2558 }
 0x436   : > { %v1229_v36 = vmul.f32 %v2559_v35, %v2555_v26 }
 0x437   : > { %v1441_v60 = vpop.permute.xlu1 %1440 }
 0x438   : > { %v1231_v41 = vpack.c.bf16 %v1229_v36, %v1229_v36 }
 0x439   : > { %p2349_p8 = scmp.ne.s32.totalorder %s3126_s6, 1 }
 0x43a   : > { %2419 = vmatmul.mubr.msk.bf16.vlgmr.msra.gmra.mxu0 %vm1207_vm4, %v1231_v41 }
 0x43b   : > { %2429 = vmatpush3.bf16.xpose.msra.mxu0 %v1398_v42  ;;  %2430 = vmatprep.mubr.msk.bf16.mxu0 %vm2621_vm1, %v2620_v37 }
 0x43c   : > { %2440 = vmatprep.subr.bf16.mxu0 %v2620_v37 }
 0x442   : > { %2431 = vmatmul.mubr.msk.bf16.vlgmr.msra.gmra.mxu0 %vm1112_vm3, %v1391_v43 }
 0x443   : > { %2442 = vmatprep.mubr.msk.bf16.mxu0 %vm2621_vm1, %v2620_v37 }
 0x4f2   : > { %v1275_v45 = vpop.f32.mrf.mxu1 }
 0x4f4   : > { %v2414_v47 = vpop.f32.mrf.mxu1 }
 0x4f6   : > { %v1278_v48 = vpop.f32.mrf.mxu1 }
 0x4f8   : > { %v2415_v49 = vpop.f32.mrf.mxu1 }
 0x4fa   : > { %v1323_v52 = vpop.f32.mrf.mxu0 }
 0x4fb   : > { %v1329_v53 = vpack.c.bf16 %v1323_v52, %v1275_v45 }
 0x4fc   : > { %v2420_v54 = vpop.f32.mrf.mxu0 }
 0x4fd   : > { %2425 = vmatmul.mubr.msk.bf16.vlgmr.msra.gmra.mxu1 %vm1112_vm3, %v1329_v53 }
 0x4fe   : > { %2435 = vmatpush3.bf16.xpose.msra.mxu1 %v1448_v55  ;;  %v1326_v56 = vpop.f32.mrf.mxu0  ;;  %2436 = vmatprep.mubr.msk.bf16.mxu1 %vm2621_vm1, %v2620_v37 }
 0x4ff   : > { %2446 = vmatprep.subr.bf16.mxu1 %v2620_v37 }
 0x500   : > { %v2421_v57 = vpop.f32.mrf.mxu0 }
 0x502   : > { %v1434_v58 = vpop.f32.mrf.mxu0 }
 0x503   : > { %v1435_v59 = vadd.f32 %v1434_v58, %v2893_v0 }
 0x504   : > { %v2432_v61 = vpop.f32.mrf.mxu0 }
 0x505   : > { %2437 = vmatmul.mubr.msk.bf16.vlgmr.msra.gmra.mxu1 %vm1112_vm3, %v1441_v60  ;;  %v1490_v62 = vsel %vm1207_vm4, %v1435_v59, -inf }
 0x506   : > { %1491 = vmax.xlane.f32.xlu1 %v1490_v62  ;;  %v1437_v63 = vpop.f32.mrf.mxu0  ;;  %2448 = vmatprep.mubr.msk.bf16.mxu1 %vm2621_vm1, %v2620_v37 }
 0x507   : > { %v2543_v63 = vld [vmem:[%s3116_s8] sm:$0xff]  }
 0x508   : > { %v2433_v1 = vpop.f32.mrf.mxu0 }
 0x58f   : > { %v1492_v2 = vpop.xlane.xlu1 %1491 }
 0x590   : > { %v1496_v3 = vsub.f32 %v1435_v59, %v1492_v2 }
 0x592   : > { %v1498_v4 = vmul.f32 1.442695, %v1496_v3 }
 0x594   : > { %2560 = vpow2.f32 %v1498_v4 }
 0x5a1   : > { %v2561_v5 = vpop.eup %2560 }
 0x5a2   : > { %v1502_v6 = vsel %vm1207_vm4, %v2561_v5, 0.0 }
 0x5a3   : > { %1503 = vadd.xlane.f32.xlu1 %v1502_v6 }
 0x5bd   : > { %v1375_v0 = vpop.f32.mrf.mxu1 }
 0x5be   : > { %v1388_v45 = vadd.f32 %v2325_v44, %v1375_v0 }
 0x5bf   : > { %v2426_v7 = vpop.f32.mrf.mxu1 }
 0x5c1   : > { %v1378_v9 = vpop.f32.mrf.mxu1 }
 0x5c2   : > { %v1389_v51 = vadd.f32 %v2325_v44, %v1378_v9 }
 0x5c3   : > { %v2427_v10 = vpop.f32.mrf.mxu1 }
 0x5c5   : > { %v1484_v11 = vpop.f32.mrf.mxu1 }
 0x5c6   : > { %v1485_v12 = vadd.f32 %v1484_v11, %v2897_v8 }
 0x5c7   : > { %v2438_v13 = vpop.f32.mrf.mxu1 }
 0x5c8   : > { %v1493_v14 = vsel %vm1207_vm4, %v1485_v12, -inf }
 0x5c9   : > { %1494 = vmax.xlane.f32.xlu0 %v1493_v14  ;;  %v1487_v15 = vpop.f32.mrf.mxu1 }
 0x5cb   : > { %v2439_v16 = vpop.f32.mrf.mxu1 }
 0x5df   : > { %1562 = vrot.lane.b32.xlu0 %v2873_v50, %s2627_s15 }
 0x62c   : > { %v1504_v23 = vpop.xlane.xlu1 %1503 }
 0x652   : > { %v1495_v17 = vpop.xlane.xlu0 %1494 }
 0x653   : > { %v1497_v18 = vsub.f32 %v1485_v12, %v1495_v17 }
 0x655   : > { %v1500_v19 = vmul.f32 1.442695, %v1497_v18 }
 0x656   : > { %v1563_v20 = vpop.permute.xlu0 %1562 }
 0x657   : > { %2562 = vpow2.f32 %v1500_v19  ;;  %v1568_v21 = vsel %vm1237_vm5, %v1563_v20, 0  ;;  %v2332_v19 = vld [vmem:[%s3118_s22] ss:$0 sm:$0xff] }
 0x658   : > { %2447 = vmatpush3.bf16.msra.mxu1 %v1568_v21  ;;  %2564 = vrcp.f32 %v1504_v23  ;;  %v2333_v23 = vld [vmem:[%s3120_s24] ss:$0 sm:$0xff] }
 0x659   : > { %2458 = vmatprep.subr.bf16.mxu1 %v2620_v37 }
 0x664   : > { %v2563_v8 = vpop.eup %2562 }
 0x665   : > { %v1505_v22 = vsel %vm1207_vm4, %v2563_v8, 0.0  ;;  %v2565_v24 = vpop.eup %2564 }
 0x666   : > { %1506 = vadd.xlane.f32.xlu1 %v1505_v22  ;;  %v1510_v25 = vmul.f32 %v2565_v24, %v2561_v5 }
 0x668   : > { %v1512_v28 = vpack.c.bf16 %v1510_v25, %v1510_v25 }
 0x677   : > { %1514 = vrot.lane.b32.xlu1 %v2870_v46, %s2627_s15 }
 0x6ef   : > { %v1507_v50 = vpop.xlane.xlu1 %1506 }
 0x6f0   : > { %2566 = vrcp.f32 %v1507_v50 }
 0x6f3   : > { %v1515_v26 = vpop.permute.xlu1 %1514 }
 0x6f4   : > { %v1520_v27 = vsel %vm1237_vm5, %v1515_v26, 0 }
 0x6f5   : > { %2441 = vmatpush3.bf16.msra.mxu0 %v1520_v27  ;;  %v2544_v27 = vld [vmem:[%s2823_s17 + $0x38] sm:$0xff]  }
 0x6f6   : > { %2452 = vmatprep.subr.bf16.mxu0 %v2620_v37 }
 0x6f8   : > { %2443 = vmatmul.mubr.msk.bf16.vlgmr.msra.gmra.mxu0 %vm1207_vm4, %v1512_v28  ;;  %v2545_v28 = vld [vmem:[%s2823_s17 + $0x30] sm:$0xff]  }
 0x6f9   : > { %2454 = vmatprep.mubr.msk.bf16.mxu0 %vm2621_vm1, %v2620_v37  ;;  %2453 = vmatpush3.bf16.msra.mxu0 %v2541_v31  ;;  %v2549_v31 = vld [vmem:[%s2823_s17 + $0x10] sm:$0xff]  }
 0x6fa   : > { %2466 = vmatprep.subr.bf16.mxu0 %v2620_v37 }
 0x6fd   : > { %v2567_v46 = vpop.eup %2566 }
 0x6fe   : > { %v1511_v29 = vmul.f32 %v2567_v46, %v2563_v8  ;;  %v2546_v46 = vld [vmem:[%s2823_s17 + $0x28] sm:$0xff]  }
 0x700   : > { %v1513_v30 = vpack.c.bf16 %v1511_v29, %v1511_v29  ;;  %v2547_v29 = vld [vmem:[%s2823_s17 + $0x20] sm:$0xff]  }
 0x702   : > { %2449 = vmatmul.mubr.msk.bf16.vlgmr.msra.gmra.mxu1 %vm1207_vm4, %v1513_v30  ;;  %v2548_v30 = vld [vmem:[%s2823_s17 + $0x18] sm:$0xff]  }
 0x703   : > { %2462 = vmatprep.mubr.msk.bf16.mxu1 %vm2621_vm1, %v2620_v37 }
 0x7b8   : > { %v1556_v32 = vpop.f32.mrf.mxu0 }
 0x7ba   : > { %v2444_v33 = vpop.f32.mrf.mxu0 }
 0x7bb   : > { %v2551_v33 = vld [vmem:[%s2823_s17] sm:$0xff]  }
 0x7bc   : > { %v1559_v34 = vpop.f32.mrf.mxu0 }
 0x7bd   : > { %v2334_v34 = vld [vmem:[%s3122_s13] ss:$0 sm:$0xff] }
 0x7be   : > { %v2445_v35 = vpop.f32.mrf.mxu0 }
 0x7c2   : > { %v1604_v36 = vpop.f32.mrf.mxu1 }
 0x7c3   : > { %v1610_v38 = vpack.c.bf16 %v1604_v36, %v1556_v32  ;;  %v2550_v32 = vld [vmem:[%s2823_s17 + $0x8] sm:$0xff]  }
 0x7c4   : > { %v2450_v41 = vpop.f32.mrf.mxu1 }
 0x7c5   : > { %2455 = vmatmul.mubr.msk.bf16.vlgmr.msra.gmra.mxu0 %vm1112_vm3, %v1610_v38 }
 0x7c6   : > { %v1607_v42 = vpop.f32.mrf.mxu1  ;;  %2482 = vmatprep.mubr.msk.bf16.mxu0 %vm2621_vm1, %v2620_v37  ;;  %2467 = vmatpush3.bf16.msra.mxu0 %v2544_v27 }
 0x7c7   : > { %2468 = vmatprep.subr.bf16.mxu0 %v2620_v37 }
 0x7c8   : > { %v2451_v43 = vpop.f32.mrf.mxu1 }
 0x7ca   : > { %2469 = vmatpush3.bf16.msra.mxu0 %v2545_v28 }
 0x7cb   : > { %2470 = vmatprep.subr.bf16.mxu0 %v2620_v37 }
 0x7ce   : > { %2471 = vmatpush3.bf16.msra.mxu0 %v2546_v46 }
 0x7cf   : > { %2472 = vmatprep.subr.bf16.mxu0 %v2620_v37 }
 0x7d2   : > { %2473 = vmatpush3.bf16.msra.mxu0 %v2547_v29  ;;  %v2347_v29 = vld [vmem:[%s925_s27] ss:$0 sm:$0xff] }
 0x7d3   : > { %2474 = vmatprep.subr.bf16.mxu0 %v2620_v37 }
 0x7d6   : > { %2475 = vmatpush3.bf16.msra.mxu0 %v2548_v30 }
 0x7d7   : > { %2476 = vmatprep.subr.bf16.mxu0 %v2620_v37 }
 0x7da   : > { %2477 = vmatpush3.bf16.msra.mxu0 %v2549_v31  ;;  %v2348_v31 = vld [vmem:[%s932_s29] ss:$0 sm:$0xff] }
 0x7db   : > { %2478 = vmatprep.subr.bf16.mxu0 %v2620_v37 }
 0x7de   : > { %2479 = vmatpush3.bf16.msra.mxu0 %v2550_v32 }
 0x7df   : > { %2480 = vmatprep.subr.bf16.mxu0 %v2620_v37 }
 0x7e2   : > { %2481 = vmatpush3.bf16.msra.mxu0 %v2551_v33 }
 0x885   : > { %v1656_v47 = vpop.f32.mrf.mxu0 }
 0x886   : > { %v1663_v48 = vadd.f32 %v1656_v47, %v1388_v45 }
 0x887   : > { %v2456_v49 = vpop.f32.mrf.mxu0 }
 0x888   : > { %v1665_v52 = vadd.f32 %v1663_v48, %v2852_v39  ;;  %v2542_v39 = vld [vmem:[%s3116_s8 + $0x8] sm:$0xff]  }
 0x889   : > { %v1659_v53 = vpop.f32.mrf.mxu0  ;;  %2459 = vmatpush3.bf16.msra.mxu1 %v2542_v39 }
 0x88a   : > { %v1664_v54 = vadd.f32 %v1659_v53, %v1389_v51  ;;  %v1669_v55 = vsel %vm1048_vm2, %v1665_v52, 0.0  ;;  %v1678_v56 = vmul.f32 %v1665_v52, %v1665_v52  ;;  %2460 = vmatprep.subr.bf16.mxu1 %v2620_v37 }
 0x88b   : > { %1670 = vadd.xlane.f32.xlu1 %v1669_v55  ;;  %v2457_v57 = vpop.f32.mrf.mxu0 }
 0x88c   : > { %v1666_v58 = vadd.f32 %v1664_v54, %v2854_v40  ;;  %v1680_v59 = vsel %vm1048_vm2, %v1678_v56, 0.0 }
 0x88d   : > { %2461 = vmatpush3.bf16.msra.mxu1 %v2543_v63  ;;  %v2338_v63 = vld [vmem:[%s918_s25] ss:$0 sm:$0xff] }
 0x88e   : > { %v1672_v60 = vsel %vm1048_vm2, %v1666_v58, 0.0  ;;  %v1679_v61 = vmul.f32 %v1666_v58, %v1666_v58 }
 0x88f   : > { %1681 = vadd.xlane.f32.xlu1 %v1680_v59  ;;  %1673 = vadd.xlane.f32.xlu0 %v1672_v60 }
 0x890   : > { %v1683_v62 = vsel %vm1048_vm2, %v1679_v61, 0.0 }
 0x893   : > { %1684 = vadd.xlane.f32.xlu0 %v1683_v62 }
 0x914   : > { %v1671_v1 = vpop.xlane.xlu1 %1670 }
 0x915   : > { %v1676_v2 = vmul.f32 0.03125, %v1671_v1 }
 0x917   : > { %v1688_v4 = vmul.f32 %v1676_v2, %v1676_v2  ;;  %v1694_v16 = vsub.f32 %v1665_v52, %v1676_v2 }
 0x918   : > { %v1682_v3 = vpop.xlane.xlu1 %1681  ;;  %v1674_v40 = vpop.xlane.xlu0 %1673 }
 0x919   : > { %v1686_v5 = vmul.f32 0.03125, %v1682_v3  ;;  %v1677_v6 = vmul.f32 0.03125, %v1674_v40 }
 0x91b   : > { %v1690_v0 = vsub.f32 %v1686_v5, %v1688_v4  ;;  %v1689_v10 = vmul.f32 %v1677_v6, %v1677_v6  ;;  %v1695_v20 = vsub.f32 %v1666_v58, %v1677_v6 }
 0x91c   : > { %v1685_v7 = vpop.xlane.xlu0 %1684 }
 0x91d   : > { %v1692_v9 = vmax.f32 %v1690_v0, 0.0  ;;  %v1687_v11 = vmul.f32 0.03125, %v1685_v7 }
 0x91f   : > { %v1696_v12 = vadd.f32 1e-12, %v1692_v9  ;;  %v1691_v13 = vsub.f32 %v1687_v11, %v1689_v10 }
 0x921   : > { %2568 = vrsqrt.f32 %v1696_v12  ;;  %v1693_v14 = vmax.f32 %v1691_v13, 0.0 }
 0x923   : > { %v1697_v15 = vadd.f32 1e-12, %v1693_v14 }
 0x925   : > { %2570 = vrsqrt.f32 %v1697_v15 }
 0x92e   : > { %v2569_v17 = vpop.eup %2568 }
 0x92f   : > { %v1700_v18 = vmul.f32 %v2569_v17, %v1694_v16 }
 0x931   : > { %v1708_v22 = vmul.f32 %v2332_v19, %v1700_v18 }
 0x932   : > { %v2571_v21 = vpop.eup %2570 }
 0x933   : > { %v1701_v8 = vmul.f32 %v2571_v21, %v1695_v20  ;;  %v1716_v50 = vadd.f32 %v2333_v23, %v1708_v22 }
 0x935   : > { %v1709_v24 = vmul.f32 %v2332_v19, %v1701_v8 }
 0x937   : > { %v2981_v25 = vadd.f32 %v2333_v23, %v1709_v24 }
 0x939   : > { %v1718_v26 = vpack.c.bf16 %v2981_v25, %v1716_v50 }
 0x93b   : > { %2463 = vmatmul.mubr.msk.bf16.vlgmr.msra.gmra.mxu1 %vm1048_vm2, %v1718_v26 }
 0x9fb   : > { %v1779_v35 = vpop.f32.mrf.mxu1 }
 0x9fc   : > { %v1780_v36 = vadd.f32 %v2334_v34, %v1779_v35 }
 0x9fd   : > { %v2464_v38 = vpop.f32.mrf.mxu1 }
 0x9fe   : > { %v1786_v41 = vmul.f32 %v1780_v36, %v1780_v36 }
 0x9ff   : > { %v1782_v42 = vpop.f32.mrf.mxu1 }
 0xa00   : > { %v1788_v43 = vmul.f32 %v1786_v41, %v1780_v36  ;;  %v1783_v44 = vadd.f32 %v2334_v34, %v1782_v42 }
 0xa01   : > { %v2465_v45 = vpop.f32.mrf.mxu1 }
 0xa02   : > { %v1790_v47 = vmul.f32 0.044715, %v1788_v43  ;;  %v1787_v48 = vmul.f32 %v1783_v44, %v1783_v44 }
 0xa04   : > { %v1792_v49 = vadd.f32 %v1790_v47, %v1780_v36  ;;  %v1789_v51 = vmul.f32 %v1787_v48, %v1783_v44 }
 0xa06   : > { %v1794_v37 = vmul.f32 0.7978846, %v1792_v49  ;;  %v1791_v52 = vmul.f32 0.044715, %v1789_v51 }
 0xa08   : > { %2572 = vtanh.f32 %v1794_v37  ;;  %v1793_v53 = vadd.f32 %v1791_v52, %v1783_v44 }
 0xa0a   : > { %v1795_v54 = vmul.f32 0.7978846, %v1793_v53 }
 0xa0c   : > { %2574 = vtanh.f32 %v1795_v54 }
 0xa15   : > { %v2573_v55 = vpop.eup %2572 }
 0xa16   : > { %v1798_v56 = vadd.f32 1.0, %v2573_v55 }
 0xa18   : > { %v1800_v58 = vmul.f32 0.5, %v1798_v56 }
 0xa19   : > { %v2575_v57 = vpop.eup %2574 }
 0xa1a   : > { %v1799_v59 = vadd.f32 1.0, %v2575_v57  ;;  %v1802_v61 = vmul.f32 %v1800_v58, %v1780_v36 }
 0xa1c   : > { %v1801_v60 = vmul.f32 0.5, %v1799_v59 }
 0xa1e   : > { %v1803_v62 = vmul.f32 %v1801_v60, %v1783_v44 }
 0xa20   : > { %v1804_v39 = vpack.c.bf16 %v1803_v62, %v1802_v61 }
 0xa22   : > { %2483 = vmatmul.mubr.bf16.vlgmr.msra.gmra.mxu0 %v1804_v39 }
 0xae2   : > { %v1910_v1 = vpop.f32.mrf.mxu0 }
 0xae3   : > { %v1911_v2 = vadd.f32 %v2338_v63, %v1910_v1 }
 0xae4   : > { %v2484_v3 = vpop.f32.mrf.mxu0 }
 0xae5   : > { %v1917_v40 = vadd.f32 %v1911_v2, %v1716_v50 }
 0xae6   : > { %v1913_v4 = vpop.f32.mrf.mxu0 }
 0xae7   : > { %v1914_v5 = vadd.f32 %v2338_v63, %v1913_v4  ;;  %v1921_v6 = vsel %vm1048_vm2, %v1917_v40, 0.0  ;;  %v1929_v0 = vmul.f32 %v1917_v40, %v1917_v40 }
 0xae8   : > { %1922 = vadd.xlane.f32.xlu1 %v1921_v6  ;;  %v2485_v7 = vpop.f32.mrf.mxu0 }
 0xae9   : > { %v1918_v9 = vadd.f32 %v1914_v5, %v2981_v25  ;;  %v1931_v10 = vsel %vm1048_vm2, %v1929_v0, 0.0 }
 0xaeb   : > { %v1924_v11 = vsel %vm1048_vm2, %v1918_v9, 0.0  ;;  %v1930_v12 = vmul.f32 %v1918_v9, %v1918_v9 }
 0xaec   : > { %1932 = vadd.xlane.f32.xlu1 %v1931_v10  ;;  %1925 = vadd.xlane.f32.xlu0 %v1924_v11 }
 0xaed   : > { %v1934_v13 = vsel %vm1048_vm2, %v1930_v12, 0.0 }
 0xaf0   : > { %1935 = vadd.xlane.f32.xlu0 %v1934_v13 }
 0xb71   : > { %v1923_v14 = vpop.xlane.xlu1 %1922 }
 0xb72   : > { %v1927_v15 = vmul.f32 0.03125, %v1923_v14 }
 0xb74   : > { %v1939_v18 = vmul.f32 %v1927_v15, %v1927_v15  ;;  %v1945_v28 = vsub.f32 %v1917_v40, %v1927_v15 }
 0xb75   : > { %v1933_v16 = vpop.xlane.xlu1 %1932  ;;  %v1926_v17 = vpop.xlane.xlu0 %1925 }
 0xb76   : > { %v1937_v19 = vmul.f32 0.03125, %v1933_v16  ;;  %v1928_v20 = vmul.f32 0.03125, %v1926_v17 }
 0xb78   : > { %v1941_v21 = vsub.f32 %v1937_v19, %v1939_v18  ;;  %v1940_v23 = vmul.f32 %v1928_v20, %v1928_v20  ;;  %v1946_v33 = vsub.f32 %v1918_v9, %v1928_v20 }
 0xb79   : > { %v1936_v8 = vpop.xlane.xlu0 %1935 }
 0xb7a   : > { %v1943_v22 = vmax.f32 %v1941_v21, 0.0  ;;  %v1938_v24 = vmul.f32 0.03125, %v1936_v8 }
 0xb7c   : > { %v1947_v50 = vadd.f32 1e-12, %v1943_v22  ;;  %v1942_v25 = vsub.f32 %v1938_v24, %v1940_v23 }
 0xb7e   : > { %2576 = vrsqrt.f32 %v1947_v50  ;;  %v1944_v26 = vmax.f32 %v1942_v25, 0.0 }
 0xb80   : > { %v1948_v27 = vadd.f32 1e-12, %v1944_v26 }
 0xb82   : > { %2578 = vrsqrt.f32 %v1948_v27 }
 0xb8b   : > { %v2577_v46 = vpop.eup %2576 }
 0xb8c   : > { %v1951_v30 = vmul.f32 %v2577_v46, %v1945_v28 }
 0xb8e   : > { %v1959_v32 = vmul.f32 %v2347_v29, %v1951_v30 }
 0xb8f   : > { %v2579_v34 = vpop.eup %2578 }
 0xb90   : > { %v1967_v35 = vadd.f32 %v2348_v31, %v1959_v32  ;;  %v1952_v36 = vmul.f32 %v2579_v34, %v1946_v33 }
 0xb92   : > { %1969 = vst.msk [vmem:[#allocation2] sm:$0xff] %vm1048_vm2, %v1967_v35  ;;  %v1960_v38 = vmul.f32 %v2347_v29, %v1952_v36  ;;  %1974 = sbr.rel (%p2349_p8) target bundleno = 2971 (0xb9b), region = 92 }
 0xb94   : > { %v1968_v41 = vadd.f32 %v2348_v31, %v1960_v38 }
 0xb96   : > { %1970 = vst.msk [vmem:[#allocation2 + $0x8] sm:$0xff] %vm1048_vm2, %v1968_v41 }
 0xb97   : > { %v1976_v42 = vrot.slane %v1968_v41, 7  ;;  %vm1978_vm6 = vcmask 1040384   ;;  %vm1980_vm7 = vcmask 254976  }
 0xb99   : > { %v1979_v43 = vsel %vm1978_vm6, %v1967_v35, %v1976_v42 }
 0xb9a   : > { %1981 = vst.msk [vmem:[%s936_s21] sm:$0x3] %vm1980_vm7, %v1979_v43 }
 0xb9b PF: > { %s3128_s8 = sld [smem:[#allocation6_spill]] }
 0xb9c   : > { %s3129_s21 = sld [smem:[#allocation4_spill]] }
 0xb9d   : > { %s3130_s22 = sld [smem:[#allocation5_spill]] }
 0xb9e   : > { %s3131_s23 = sld [smem:[#allocation7_spill]] }
 0xb9f   : > { %s3132_s24 = sld [smem:[#allocation8_spill]] }
 0xba1   : > { %s26_s25 = sadd.s32 1, %s3128_s8  }
 0xba2   : > { %p23_p9 = scmp.ge.s32.totalorder %s26_s25, 6  }
 0xba4   :  { %25 = sbr.rel (!%p23_p9) target bundleno = 15 (0xf), region = 167 }

</bundles_post_ra>
